<compile_context>
chip_gen: v7x
topology: tpu7x:2x2x1
jax: 0.10.0
libtpu: 0.0.40
codegen_flags: <defaults>
</compile_context>

<pallas_src>
import jax
import jax.numpy as jnp
from jax.experimental import pallas as pl
from jax.experimental.pallas import tpu as pltpu


_VMEM = pl.BlockSpec(memory_space=pltpu.MemorySpace.VMEM)


# ---------------------------------------------------------------------------
# Fused Pallas kernel: all STGCN layers + output Linear/mean in one call
# ---------------------------------------------------------------------------
def _make_fused_kernel(num_layers, t_steps, num_nodes):
    T, N = t_steps, num_nodes

    def kernel(*refs):
        # refs layout:
        #   x_ref (T*N, Cin) f32, abig_ref (T*N, T*N) bf16,
        #   per layer: kw(3*Cin, Cout) bf16, kb(1,Cout) f32, inw(1,Cout) f32,
        #              inb(1,Cout) f32, gw(Cout,Cout) bf16, gb(1,Cout) f32
        #   ow (H, O) bf16, ob (1, O) f32, o_ref (N, O) f32
        x_ref, abig_ref = refs[0], refs[1]
        layer_refs = [refs[2 + 6 * i: 2 + 6 * (i + 1)] for i in range(num_layers)]
        ow_ref = refs[2 + 6 * num_layers]
        ob_ref = refs[3 + 6 * num_layers]
        o_ref = refs[4 + 6 * num_layers]

        a_big = abig_ref[...]                # kron(I_T, A_norm), bf16
        # Row index r = t*N + n; hoisted once (JAX does not CSE iota/broadcast).
        row = jax.lax.broadcasted_iota(jnp.int32, (T * N, 1), 0)
        h = x_ref[...]                       # (T*N, Cin) f32 activations

        for kw_ref, kb_ref, inw_ref, inb_ref, gw_ref, gb_ref in layer_refs:
            # --- temporal Conv1d k=3 pad=1: one fused (T*N,3Cin)@(3Cin,Cout) ---
            # hp[r] = h[r-N] (tap t-1), hn[r] = h[r+N] (tap t+1); XLU roll by a
            # whole number of sublane groups, boundary timesteps masked to 0.
            hp = pltpu.roll(h, N, axis=0)
            hn = pltpu.roll(h, (T - 1) * N, axis=0)          # == roll by -N
            hp = jnp.where(row >= N, hp, 0.0)                # zero pad t = 0
            hn = jnp.where(row < (T - 1) * N, hn, 0.0)       # zero pad t = T-1
            h_cat = jnp.concatenate([hp, h, hn], axis=1).astype(jnp.bfloat16)
            y = jnp.dot(h_cat, kw_ref[...],
                        preferred_element_type=jnp.float32) + kb_ref[...]

            # --- InstanceNorm1d over T (biased var, eps=1e-5), then ReLU ---
            cout = y.shape[-1]
            y3 = y.reshape(T, N, cout)                       # free reshape
            mean = jnp.mean(y3, axis=0)                      # (N, Cout)
            var = jnp.mean((y3 - mean[None]) ** 2, axis=0)   # two-pass, biased
            scale = jax.lax.rsqrt(var + 1e-5) * inw_ref[...]
            shift = inb_ref[...] - mean * scale
            yr = jnp.maximum(y3 * scale[None] + shift[None], 0.0)
            yr = yr.reshape(T * N, cout)                     # free reshape

            # --- spatial GCN, all T at once: relu(Abig @ (Y W) + b) ---
            # TODO(synk): at scale replace the block-diagonal Abig matmul
            # (87.5% zero MACs, O((TN)^2) VMEM) with the lane-dense form
            # (N, N) @ (N, T*Cout) via a layout transpose of yr.
            hg = jnp.dot(yr.astype(jnp.bfloat16), gw_ref[...],
                         preferred_element_type=jnp.float32)
            h = jnp.maximum(
                jnp.dot(a_big, hg.astype(jnp.bfloat16),
                        preferred_element_type=jnp.float32) + gb_ref[...], 0.0)

        # --- output: mean over T first (exact), then one Linear ---
        hidden = h.shape[-1]
        hm = jnp.mean(h.reshape(T, N, hidden), axis=0)       # (N, H)
        o_ref[...] = (jnp.dot(hm.astype(jnp.bfloat16), ow_ref[...],
                              preferred_element_type=jnp.float32)
                      + ob_ref[...])

    return kernel


def stgcn_fused_call(x_seq, a_norm, layer_params, out_w, out_b):
    """x_seq: (T, N, Cin); a_norm: (N, N); returns (N, out_channels)."""
    T, N, cin = x_seq.shape
    # Block-diagonal adjacency so the per-timestep GCN becomes one matmul.
    # bf16 halves its VMEM footprint; fine at toy sizes (see in-kernel TODO).
    a_big = jnp.kron(jnp.eye(T, dtype=jnp.float32), a_norm).astype(jnp.bfloat16)
    x_flat = x_seq.reshape(T * N, cin)

    args = [x_flat, a_big]
    for kw, kb, inw, inb, gw, gb in layer_params:
        k, cin_l, cout_l = kw.shape
        # Fuse the 3 conv taps into one (3*Cin, Cout) MXU weight (tap order
        # [t-1, t, t+1] matches the in-kernel [hp, h, hn] channel concat).
        kw_fused = kw.reshape(k * cin_l, cout_l).astype(jnp.bfloat16)
        args.extend([kw_fused, kb, inw, inb, gw.astype(jnp.bfloat16), gb])
    args.extend([out_w.astype(jnp.bfloat16), out_b])

    out_ch = out_w.shape[-1]
    kernel = _make_fused_kernel(len(layer_params), T, N)
    # TODO(synk): with a batch of graph sequences, add a leading grid axis with
    # dimension_semantics=("parallel",) so v7x's two TensorCores both work; a
    # single sequence has no batch dim so the kernel stays gridless here.
    # TODO(synk): if N/T/hidden grow beyond VMEM, switch to a gridded pipeline
    # over T (conv+IN+GCN per time tile, A via scalar-prefetch index_map).
    return pl.pallas_call(
        kernel,
        out_shape=jax.ShapeDtypeStruct((N, out_ch), jnp.float32),
        in_specs=[_VMEM] * len(args),
        out_specs=_VMEM,
        compiler_params=pltpu.CompilerParams(
            vmem_limit_bytes=32 * 1024 * 1024),   # sized for v7x (64 MiB phys)
    )(*args)


# ---------------------------------------------------------------------------
# Plain-JAX glue: dense GCN normalization, parameter setup, full forward
# ---------------------------------------------------------------------------
def normalized_adjacency(edge_index, edge_weight, num_nodes):
    """softmax(edge_weight) -> dense A -> add self loops -> sym-normalize."""
    # TODO(synk): edge scatter to a dense matrix stays in plain JAX (no clean
    # Pallas gather/scatter for arbitrary edge lists at this size).
    w = jax.nn.softmax(edge_weight)                       # F.softmax(dim=0)
    src, dst = edge_index[0], edge_index[1]
    a = jnp.zeros((num_nodes, num_nodes), jnp.float32)
    a = a.at[dst, src].add(w)                             # A[i, j]: edge j -> i
    a = a + jnp.eye(num_nodes, dtype=jnp.float32)         # self loops, weight 1
    deg = jnp.sum(a, axis=1)
    dinv = jnp.where(deg > 0, jax.lax.rsqrt(deg), 0.0)
    return a * dinv[:, None] * dinv[None, :]


def init_params(key, in_channels, hidden_channels, out_channels, num_layers=3):
    layers = []
    dims = [(in_channels, hidden_channels)] + \
           [(hidden_channels, hidden_channels)] * (num_layers - 2)
    for cin, cout in dims:
        key, k0, k1, k2 = jax.random.split(key, 4)
        # (K, Cin, Cout); torch Conv1d weight (Cout, Cin, K) == kw.permute(2,1,0)
        kw = 0.1 * jax.random.normal(k0, (3, cin, cout), jnp.float32)
        kb = 0.1 * jax.random.normal(k1, (1, cout), jnp.float32)
        inw = jnp.ones((1, cout), jnp.float32)    # InstanceNorm affine: w=1
        inb = jnp.zeros((1, cout), jnp.float32)   #                      b=0
        gw = 0.1 * jax.random.normal(k2, (cout, cout), jnp.float32)
        gb = jnp.zeros((1, cout), jnp.float32)    # GCNConv bias init = 0
        layers.append((kw, kb, inw, inb, gw, gb))
    key, k3, k4 = jax.random.split(key, 3)
    w = 0.1 * jax.random.normal(k3, (hidden_channels, out_channels), jnp.float32)
    b = 0.1 * jax.random.normal(k4, (1, out_channels), jnp.float32)
    return {"layers": layers, "output": (w, b)}


@jax.jit
def stgcn_forward(params, x_seq, edge_index, edge_attr):
    """x_seq: (T, N, Cin) = torch.stack([g.x for g in graph_sequence])."""
    num_nodes = x_seq.shape[1]
    a_norm = normalized_adjacency(edge_index, edge_attr[:, 0], num_nodes)
    w, b = params["output"]
    return stgcn_fused_call(x_seq, a_norm, params["layers"], w, b)


# ---------------------------------------------------------------------------
if __name__ == "__main__":
    key = jax.random.PRNGKey(0)
    NUM_NODES, T, E = 16, 8, 40
    IN_CH, HIDDEN, OUT_CH = 4, 32, 8

    k_param, k_x, k_src, k_dst, k_w = jax.random.split(key, 5)
    params = init_params(k_param, IN_CH, HIDDEN, OUT_CH, num_layers=3)

    # graph sequence: T graphs sharing edge_index / edge_attr of graph 0
    x_seq = jax.random.normal(k_x, (T, NUM_NODES, IN_CH), jnp.float32)
    src = jax.random.randint(k_src, (E,), 0, NUM_NODES)
    dst = jax.random.randint(k_dst, (E,), 0, NUM_NODES)
    dst = jnp.where(dst == src, (dst + 1) % NUM_NODES, dst)  # no self loops
    edge_index = jnp.stack([src, dst]).astype(jnp.int32)     # (2, E)
    edge_attr = jax.random.normal(k_w, (E, 1), jnp.float32)  # (E, 1)

    out = stgcn_forward(params, x_seq, edge_index, edge_attr)
    out = jax.block_until_ready(out)
    assert out.shape == (NUM_NODES, OUT_CH)
    assert jnp.all(jnp.isfinite(out))
    print("KERNEL_OK")
</pallas_src>

<mosaic_0001>
module attributes {stable_mosaic.version = 11 : i64} {
  func.func @kernel(%arg0: memref<128x4xf32, #tpu.memory_space<vmem>>, %arg1: memref<128x128xbf16, #tpu.memory_space<vmem>>, %arg2: memref<12x32xbf16, #tpu.memory_space<vmem>>, %arg3: memref<1x32xf32, #tpu.memory_space<vmem>>, %arg4: memref<1x32xf32, #tpu.memory_space<vmem>>, %arg5: memref<1x32xf32, #tpu.memory_space<vmem>>, %arg6: memref<32x32xbf16, #tpu.memory_space<vmem>>, %arg7: memref<1x32xf32, #tpu.memory_space<vmem>>, %arg8: memref<96x32xbf16, #tpu.memory_space<vmem>>, %arg9: memref<1x32xf32, #tpu.memory_space<vmem>>, %arg10: memref<1x32xf32, #tpu.memory_space<vmem>>, %arg11: memref<1x32xf32, #tpu.memory_space<vmem>>, %arg12: memref<32x32xbf16, #tpu.memory_space<vmem>>, %arg13: memref<1x32xf32, #tpu.memory_space<vmem>>, %arg14: memref<32x8xbf16, #tpu.memory_space<vmem>>, %arg15: memref<1x8xf32, #tpu.memory_space<vmem>>, %arg16: memref<16x8xf32, #tpu.memory_space<vmem>>) attributes {dimension_semantics = [], scalar_prefetch = 0 : i64, scratch_operands = 0 : i64, tpu.core_type = #tpu.core_type<tc>} {
    %c0 = arith.constant 0 : index
    %c0_0 = arith.constant 0 : index
    %0 = vector.load %arg1[%c0, %c0_0] : memref<128x128xbf16, #tpu.memory_space<vmem>>, vector<128x128xbf16>
    %1 = tpu.iota {dimensions = array<i32: 0>} : vector<128x1xi32>
    %c0_1 = arith.constant 0 : index
    %c0_2 = arith.constant 0 : index
    %2 = vector.load %arg0[%c0_1, %c0_2] : memref<128x4xf32, #tpu.memory_space<vmem>>, vector<128x4xf32>
    %c16_i32 = arith.constant 16 : i32
    %3 = tpu.dynamic_rotate %2 by %c16_i32 dim 0 : vector<128x4xf32>, i32 -> vector<128x4xf32>
    %c112_i32 = arith.constant 112 : i32
    %4 = tpu.dynamic_rotate %2 by %c112_i32 dim 0 : vector<128x4xf32>, i32 -> vector<128x4xf32>
    %c16_i32_3 = arith.constant 16 : i32
    %5 = vector.broadcast %c16_i32_3 : i32 to vector<128x1xi32>
    %6 = arith.cmpi sge, %1, %5 : vector<128x1xi32>
    %cst = arith.constant 0.000000e+00 : f32
    %7 = vector.shape_cast %6 : vector<128x1xi1> to vector<128x1xi1>
    %8 = vector.broadcast %7 : vector<128x1xi1> to vector<128x4xi1>
    %9 = vector.broadcast %cst : f32 to vector<128x4xf32>
    %10 = arith.select %8, %3, %9 : vector<128x4xi1>, vector<128x4xf32>
    %c112_i32_4 = arith.constant 112 : i32
    %11 = vector.broadcast %c112_i32_4 : i32 to vector<128x1xi32>
    %12 = arith.cmpi slt, %1, %11 : vector<128x1xi32>
    %cst_5 = arith.constant 0.000000e+00 : f32
    %13 = vector.shape_cast %12 : vector<128x1xi1> to vector<128x1xi1>
    %14 = vector.broadcast %13 : vector<128x1xi1> to vector<128x4xi1>
    %15 = vector.broadcast %cst_5 : f32 to vector<128x4xf32>
    %16 = arith.select %14, %4, %15 : vector<128x4xi1>, vector<128x4xf32>
    %17 = tpu.concatenate %10, %2, %16 in 1 : vector<128x4xf32>, vector<128x4xf32>, vector<128x4xf32> -> vector<128x12xf32>
    %18 = arith.truncf %17 : vector<128x12xf32> to vector<128x12xbf16>
    %c0_6 = arith.constant 0 : index
    %c0_7 = arith.constant 0 : index
    %19 = vector.load %arg2[%c0_6, %c0_7] : memref<12x32xbf16, #tpu.memory_space<vmem>>, vector<12x32xbf16>
    %cst_8 = arith.constant dense<0.000000e+00> : vector<128x32xf32>
    %20 = tpu.matmul %18, %19, %cst_8 {dimension_numbers = #tpu.dot_dimension_numbers<[1], [0], [0], [1], [0, 0, 1, 1], [], []>} : vector<128x12xbf16>, vector<12x32xbf16>, vector<128x32xf32> -> vector<128x32xf32>
    %c0_9 = arith.constant 0 : index
    %c0_10 = arith.constant 0 : index
    %21 = vector.load %arg3[%c0_9, %c0_10] : memref<1x32xf32, #tpu.memory_space<vmem>>, vector<1x32xf32>
    %22 = vector.broadcast %21 : vector<1x32xf32> to vector<128x32xf32>
    %23 = arith.addf %20, %22 : vector<128x32xf32>
    %24 = vector.shape_cast %23 : vector<128x32xf32> to vector<8x16x32xf32>
    %cst_11 = arith.constant dense<0.000000e+00> : vector<16x32xf32>
    %25 = vector.multi_reduction <add>, %24, %cst_11 [0] : vector<8x16x32xf32> to vector<16x32xf32>
    %cst_12 = arith.constant 8.000000e+00 : f32
    %26 = vector.broadcast %cst_12 : f32 to vector<16x32xf32>
    %27 = arith.divf %25, %26 : vector<16x32xf32>
    %28 = vector.shape_cast %27 : vector<16x32xf32> to vector<1x16x32xf32>
    %29 = vector.broadcast %28 : vector<1x16x32xf32> to vector<8x16x32xf32>
    %30 = arith.subf %24, %29 : vector<8x16x32xf32>
    %31 = arith.mulf %30, %30 : vector<8x16x32xf32>
    %cst_13 = arith.constant dense<0.000000e+00> : vector<16x32xf32>
    %32 = vector.multi_reduction <add>, %31, %cst_13 [0] : vector<8x16x32xf32> to vector<16x32xf32>
    %cst_14 = arith.constant 8.000000e+00 : f32
    %33 = vector.broadcast %cst_14 : f32 to vector<16x32xf32>
    %34 = arith.divf %32, %33 : vector<16x32xf32>
    %cst_15 = arith.constant 9.99999974E-6 : f32
    %35 = vector.broadcast %cst_15 : f32 to vector<16x32xf32>
    %36 = arith.addf %34, %35 : vector<16x32xf32>
    %37 = math.rsqrt %36 : vector<16x32xf32>
    %c0_16 = arith.constant 0 : index
    %c0_17 = arith.constant 0 : index
    %38 = vector.load %arg4[%c0_16, %c0_17] : memref<1x32xf32, #tpu.memory_space<vmem>>, vector<1x32xf32>
    %39 = vector.broadcast %38 : vector<1x32xf32> to vector<16x32xf32>
    %40 = arith.mulf %37, %39 : vector<16x32xf32>
    %c0_18 = arith.constant 0 : index
    %c0_19 = arith.constant 0 : index
    %41 = vector.load %arg5[%c0_18, %c0_19] : memref<1x32xf32, #tpu.memory_space<vmem>>, vector<1x32xf32>
    %42 = arith.mulf %27, %40 : vector<16x32xf32>
    %43 = vector.broadcast %41 : vector<1x32xf32> to vector<16x32xf32>
    %44 = arith.subf %43, %42 : vector<16x32xf32>
    %45 = vector.shape_cast %40 : vector<16x32xf32> to vector<1x16x32xf32>
    %46 = vector.broadcast %45 : vector<1x16x32xf32> to vector<8x16x32xf32>
    %47 = arith.mulf %24, %46 : vector<8x16x32xf32>
    %48 = vector.shape_cast %44 : vector<16x32xf32> to vector<1x16x32xf32>
    %49 = vector.broadcast %48 : vector<1x16x32xf32> to vector<8x16x32xf32>
    %50 = arith.addf %47, %49 : vector<8x16x32xf32>
    %cst_20 = arith.constant 0.000000e+00 : f32
    %51 = vector.broadcast %cst_20 : f32 to vector<8x16x32xf32>
    %52 = arith.maximumf %50, %51 : vector<8x16x32xf32>
    %53 = vector.shape_cast %52 : vector<8x16x32xf32> to vector<128x32xf32>
    %54 = arith.truncf %53 : vector<128x32xf32> to vector<128x32xbf16>
    %c0_21 = arith.constant 0 : index
    %c0_22 = arith.constant 0 : index
    %55 = vector.load %arg6[%c0_21, %c0_22] : memref<32x32xbf16, #tpu.memory_space<vmem>>, vector<32x32xbf16>
    %cst_23 = arith.constant dense<0.000000e+00> : vector<128x32xf32>
    %56 = tpu.matmul %54, %55, %cst_23 {dimension_numbers = #tpu.dot_dimension_numbers<[1], [0], [0], [1], [0, 0, 1, 1], [], []>} : vector<128x32xbf16>, vector<32x32xbf16>, vector<128x32xf32> -> vector<128x32xf32>
    %57 = arith.truncf %56 : vector<128x32xf32> to vector<128x32xbf16>
    %cst_24 = arith.constant dense<0.000000e+00> : vector<128x32xf32>
    %58 = tpu.matmul %0, %57, %cst_24 {dimension_numbers = #tpu.dot_dimension_numbers<[1], [0], [0], [1], [0, 0, 1, 1], [], []>} : vector<128x128xbf16>, vector<128x32xbf16>, vector<128x32xf32> -> vector<128x32xf32>
    %c0_25 = arith.constant 0 : index
    %c0_26 = arith.constant 0 : index
    %59 = vector.load %arg7[%c0_25, %c0_26] : memref<1x32xf32, #tpu.memory_space<vmem>>, vector<1x32xf32>
    %60 = vector.broadcast %59 : vector<1x32xf32> to vector<128x32xf32>
    %61 = arith.addf %58, %60 : vector<128x32xf32>
    %cst_27 = arith.constant 0.000000e+00 : f32
    %62 = vector.broadcast %cst_27 : f32 to vector<128x32xf32>
    %63 = arith.maximumf %61, %62 : vector<128x32xf32>
    %c16_i32_28 = arith.constant 16 : i32
    %64 = tpu.dynamic_rotate %63 by %c16_i32_28 dim 0 : vector<128x32xf32>, i32 -> vector<128x32xf32>
    %c112_i32_29 = arith.constant 112 : i32
    %65 = tpu.dynamic_rotate %63 by %c112_i32_29 dim 0 : vector<128x32xf32>, i32 -> vector<128x32xf32>
    %c16_i32_30 = arith.constant 16 : i32
    %66 = vector.broadcast %c16_i32_30 : i32 to vector<128x1xi32>
    %67 = arith.cmpi sge, %1, %66 : vector<128x1xi32>
    %cst_31 = arith.constant 0.000000e+00 : f32
    %68 = vector.shape_cast %67 : vector<128x1xi1> to vector<128x1xi1>
    %69 = vector.broadcast %68 : vector<128x1xi1> to vector<128x32xi1>
    %70 = vector.broadcast %cst_31 : f32 to vector<128x32xf32>
    %71 = arith.select %69, %64, %70 : vector<128x32xi1>, vector<128x32xf32>
    %c112_i32_32 = arith.constant 112 : i32
    %72 = vector.broadcast %c112_i32_32 : i32 to vector<128x1xi32>
    %73 = arith.cmpi slt, %1, %72 : vector<128x1xi32>
    %cst_33 = arith.constant 0.000000e+00 : f32
    %74 = vector.shape_cast %73 : vector<128x1xi1> to vector<128x1xi1>
    %75 = vector.broadcast %74 : vector<128x1xi1> to vector<128x32xi1>
    %76 = vector.broadcast %cst_33 : f32 to vector<128x32xf32>
    %77 = arith.select %75, %65, %76 : vector<128x32xi1>, vector<128x32xf32>
    %78 = tpu.concatenate %71, %63, %77 in 1 : vector<128x32xf32>, vector<128x32xf32>, vector<128x32xf32> -> vector<128x96xf32>
    %79 = arith.truncf %78 : vector<128x96xf32> to vector<128x96xbf16>
    %c0_34 = arith.constant 0 : index
    %c0_35 = arith.constant 0 : index
    %80 = vector.load %arg8[%c0_34, %c0_35] : memref<96x32xbf16, #tpu.memory_space<vmem>>, vector<96x32xbf16>
    %cst_36 = arith.constant dense<0.000000e+00> : vector<128x32xf32>
    %81 = tpu.matmul %79, %80, %cst_36 {dimension_numbers = #tpu.dot_dimension_numbers<[1], [0], [0], [1], [0, 0, 1, 1], [], []>} : vector<128x96xbf16>, vector<96x32xbf16>, vector<128x32xf32> -> vector<128x32xf32>
    %c0_37 = arith.constant 0 : index
    %c0_38 = arith.constant 0 : index
    %82 = vector.load %arg9[%c0_37, %c0_38] : memref<1x32xf32, #tpu.memory_space<vmem>>, vector<1x32xf32>
    %83 = vector.broadcast %82 : vector<1x32xf32> to vector<128x32xf32>
    %84 = arith.addf %81, %83 : vector<128x32xf32>
    %85 = vector.shape_cast %84 : vector<128x32xf32> to vector<8x16x32xf32>
    %cst_39 = arith.constant dense<0.000000e+00> : vector<16x32xf32>
    %86 = vector.multi_reduction <add>, %85, %cst_39 [0] : vector<8x16x32xf32> to vector<16x32xf32>
    %cst_40 = arith.constant 8.000000e+00 : f32
    %87 = vector.broadcast %cst_40 : f32 to vector<16x32xf32>
    %88 = arith.divf %86, %87 : vector<16x32xf32>
    %89 = vector.shape_cast %88 : vector<16x32xf32> to vector<1x16x32xf32>
    %90 = vector.broadcast %89 : vector<1x16x32xf32> to vector<8x16x32xf32>
    %91 = arith.subf %85, %90 : vector<8x16x32xf32>
    %92 = arith.mulf %91, %91 : vector<8x16x32xf32>
    %cst_41 = arith.constant dense<0.000000e+00> : vector<16x32xf32>
    %93 = vector.multi_reduction <add>, %92, %cst_41 [0] : vector<8x16x32xf32> to vector<16x32xf32>
    %cst_42 = arith.constant 8.000000e+00 : f32
    %94 = vector.broadcast %cst_42 : f32 to vector<16x32xf32>
    %95 = arith.divf %93, %94 : vector<16x32xf32>
    %cst_43 = arith.constant 9.99999974E-6 : f32
    %96 = vector.broadcast %cst_43 : f32 to vector<16x32xf32>
    %97 = arith.addf %95, %96 : vector<16x32xf32>
    %98 = math.rsqrt %97 : vector<16x32xf32>
    %c0_44 = arith.constant 0 : index
    %c0_45 = arith.constant 0 : index
    %99 = vector.load %arg10[%c0_44, %c0_45] : memref<1x32xf32, #tpu.memory_space<vmem>>, vector<1x32xf32>
    %100 = vector.broadcast %99 : vector<1x32xf32> to vector<16x32xf32>
    %101 = arith.mulf %98, %100 : vector<16x32xf32>
    %c0_46 = arith.constant 0 : index
    %c0_47 = arith.constant 0 : index
    %102 = vector.load %arg11[%c0_46, %c0_47] : memref<1x32xf32, #tpu.memory_space<vmem>>, vector<1x32xf32>
    %103 = arith.mulf %88, %101 : vector<16x32xf32>
    %104 = vector.broadcast %102 : vector<1x32xf32> to vector<16x32xf32>
    %105 = arith.subf %104, %103 : vector<16x32xf32>
    %106 = vector.shape_cast %101 : vector<16x32xf32> to vector<1x16x32xf32>
    %107 = vector.broadcast %106 : vector<1x16x32xf32> to vector<8x16x32xf32>
    %108 = arith.mulf %85, %107 : vector<8x16x32xf32>
    %109 = vector.shape_cast %105 : vector<16x32xf32> to vector<1x16x32xf32>
    %110 = vector.broadcast %109 : vector<1x16x32xf32> to vector<8x16x32xf32>
    %111 = arith.addf %108, %110 : vector<8x16x32xf32>
    %cst_48 = arith.constant 0.000000e+00 : f32
    %112 = vector.broadcast %cst_48 : f32 to vector<8x16x32xf32>
    %113 = arith.maximumf %111, %112 : vector<8x16x32xf32>
    %114 = vector.shape_cast %113 : vector<8x16x32xf32> to vector<128x32xf32>
    %115 = arith.truncf %114 : vector<128x32xf32> to vector<128x32xbf16>
    %c0_49 = arith.constant 0 : index
    %c0_50 = arith.constant 0 : index
    %116 = vector.load %arg12[%c0_49, %c0_50] : memref<32x32xbf16, #tpu.memory_space<vmem>>, vector<32x32xbf16>
    %cst_51 = arith.constant dense<0.000000e+00> : vector<128x32xf32>
    %117 = tpu.matmul %115, %116, %cst_51 {dimension_numbers = #tpu.dot_dimension_numbers<[1], [0], [0], [1], [0, 0, 1, 1], [], []>} : vector<128x32xbf16>, vector<32x32xbf16>, vector<128x32xf32> -> vector<128x32xf32>
    %118 = arith.truncf %117 : vector<128x32xf32> to vector<128x32xbf16>
    %cst_52 = arith.constant dense<0.000000e+00> : vector<128x32xf32>
    %119 = tpu.matmul %0, %118, %cst_52 {dimension_numbers = #tpu.dot_dimension_numbers<[1], [0], [0], [1], [0, 0, 1, 1], [], []>} : vector<128x128xbf16>, vector<128x32xbf16>, vector<128x32xf32> -> vector<128x32xf32>
    %c0_53 = arith.constant 0 : index
    %c0_54 = arith.constant 0 : index
    %120 = vector.load %arg13[%c0_53, %c0_54] : memref<1x32xf32, #tpu.memory_space<vmem>>, vector<1x32xf32>
    %121 = vector.broadcast %120 : vector<1x32xf32> to vector<128x32xf32>
    %122 = arith.addf %119, %121 : vector<128x32xf32>
    %cst_55 = arith.constant 0.000000e+00 : f32
    %123 = vector.broadcast %cst_55 : f32 to vector<128x32xf32>
    %124 = arith.maximumf %122, %123 : vector<128x32xf32>
    %125 = vector.shape_cast %124 : vector<128x32xf32> to vector<8x16x32xf32>
    %cst_56 = arith.constant dense<0.000000e+00> : vector<16x32xf32>
    %126 = vector.multi_reduction <add>, %125, %cst_56 [0] : vector<8x16x32xf32> to vector<16x32xf32>
    %cst_57 = arith.constant 8.000000e+00 : f32
    %127 = vector.broadcast %cst_57 : f32 to vector<16x32xf32>
    %128 = arith.divf %126, %127 : vector<16x32xf32>
    %129 = arith.truncf %128 : vector<16x32xf32> to vector<16x32xbf16>
    %c0_58 = arith.constant 0 : index
    %c0_59 = arith.constant 0 : index
    %130 = vector.load %arg14[%c0_58, %c0_59] : memref<32x8xbf16, #tpu.memory_space<vmem>>, vector<32x8xbf16>
    %cst_60 = arith.constant dense<0.000000e+00> : vector<16x8xf32>
    %131 = tpu.matmul %129, %130, %cst_60 {dimension_numbers = #tpu.dot_dimension_numbers<[1], [0], [0], [1], [0, 0, 1, 1], [], []>} : vector<16x32xbf16>, vector<32x8xbf16>, vector<16x8xf32> -> vector<16x8xf32>
    %c0_61 = arith.constant 0 : index
    %c0_62 = arith.constant 0 : index
    %132 = vector.load %arg15[%c0_61, %c0_62] : memref<1x8xf32, #tpu.memory_space<vmem>>, vector<1x8xf32>
    %133 = vector.broadcast %132 : vector<1x8xf32> to vector<16x8xf32>
    %134 = arith.addf %131, %133 : vector<16x8xf32>
    %c0_63 = arith.constant 0 : index
    %c0_64 = arith.constant 0 : index
    %135 = vector.load %arg16[%c0_63, %c0_64] : memref<16x8xf32, #tpu.memory_space<vmem>>, vector<16x8xf32>
    tpu.vector_store %arg16[%c0_63, %c0_64], %134 {strides = array<i32>} : memref<16x8xf32, #tpu.memory_space<vmem>>, vector<16x8xf32>,
    return
  }
}

</mosaic_0001>

<bundles_post_ra>
// kernel: stgcn_forward.1
= control target key start
LH: loop header
LB: loop body
LE: loop exit
PB: predicated region body
PF: predicated region fallthrough
CT: control target
= control target key end

     0   :  { %s2452_s19 = smov 8   ;;  %s2453_s20 = smov 4   ;;  %vm440_vm0 = vcmask 1045504   ;;  %v2454_v26 = vmov 0.0   ;;  %vm359_vm1 = vcmask 31744   ;;  %vm376_vm2 = vcmask 64512   ;;  %s3329_s0 = inlined_call_operand.vmem [shape: f32[128,4], index: 0, kind: input, shape index: {}]   ;;  %s3330_s2 = inlined_call_operand.vmem [shape: bf16[12,32], index: 2, kind: input, shape index: {}]   ;;  %s3331_s6 = inlined_call_operand.vmem [shape: bf16[32,32], index: 6, kind: input, shape index: {}]   ;;  %s3332_s3 = inlined_call_operand.vmem [shape: f32[1,32], index: 3, kind: input, shape index: {}]   ;;  %s3333_s4 = inlined_call_operand.vmem [shape: f32[1,32], index: 4, kind: input, shape index: {}]   ;;  %s3334_s5 = inlined_call_operand.vmem [shape: f32[1,32], index: 5, kind: input, shape index: {}]   ;;  %s3335_s1 = inlined_call_operand.vmem [shape: bf16[128,128], index: 1, kind: input, shape index: {}]   ;;  %s3336_s8 = inlined_call_operand.vmem [shape: bf16[96,32], index: 8, kind: input, shape index: {}]   ;;  %s3337_s7 = inlined_call_operand.vmem [shape: f32[1,32], index: 7, kind: input, shape index: {}]   ;;  %s3338_s12 = inlined_call_operand.vmem [shape: bf16[32,32], index: 12, kind: input, shape index: {}]   ;;  %s3339_s9 = inlined_call_operand.vmem [shape: f32[1,32], index: 9, kind: input, shape index: {}]   ;;  %s3340_s10 = inlined_call_operand.vmem [shape: f32[1,32], index: 10, kind: input, shape index: {}]   ;;  %s3341_s11 = inlined_call_operand.vmem [shape: f32[1,32], index: 11, kind: input, shape index: {}]   ;;  %s3342_s14 = inlined_call_operand.vmem [shape: bf16[32,8], index: 14, kind: input, shape index: {}]   ;;  %s3343_s13 = inlined_call_operand.vmem [shape: f32[1,32], index: 13, kind: input, shape index: {}]   ;;  %s3344_s15 = inlined_call_operand.vmem [shape: f32[1,8], index: 15, kind: input, shape index: {}]   ;;  %s3345_s16 = inlined_call_operand.vmem [shape: f32[16,8], index: 16, kind: output, shape index: {}]  }
   0x1   :  { %3347 = sst [smem:[#allocation2_spill]] %s3329_s0  ;;  %v2423_v11 = vld [vmem:[%s3330_s2] sm:$0x3f]   ;;  %vm415_vm3 = vcmask 97280   ;;  %vm541_vm4 = vcmask 261120   ;;  %s2455_s29 = smov 32  }
   0x2   :  { %s3348_s23 = sld [smem:[#allocation2_spill]]  ;;  %2256 = vmatprep.subr.msk.bf16.mxu0 %vm440_vm0, %v2423_v11  ;;  %v442_v15 = vsel %vm440_vm0, %v2423_v11, 0  ;;  %vm1208_vm5 = vcmask 523264   ;;  %vm1288_vm6 = vcmask 785408   ;;  %vm2457_vm7 = vmmov 0  }
   0x3   :  { %2099 = vmatpush3.bf16.msra.mxu0 %v442_v15 }
   0x8   :  { %v2546_v0 = vld [vmem:[%s3348_s23 + $0x10] sm:$0xff]  ;;  %v2551_v1 = vld [vmem:[%s3348_s23 + $0x18] sm:$0xff]  ;;  %v2556_v2 = vld [vmem:[%s3348_s23] sm:$0xff] }
   0x9   :  { %v2273_v3 = vpack.i.bf16 %v2551_v1, %v2546_v0  ;;  %v2563_v4 = vld [vmem:[%s3348_s23 + $0x8] sm:$0xff]  ;;  %v2568_v5 = vld [vmem:[%s3348_s23 + $0x20] sm:$0xff]  ;;  %v2584_v9 = vld [vmem:[%s3348_s23 + $0x30] sm:$0xff] }
   0xa   :  { %v2573_v6 = vld [vmem:[%s3348_s23 + $0x28] sm:$0xff]  ;;  %v2263_v7 = vpack.i.bf16 %v2563_v4, %v2556_v2  ;;  %v2589_v10 = vld [vmem:[%s3348_s23 + $0x38] sm:$0xff]  ;;  %v2601_v13 = vld [vmem:[%s3348_s23 + $0x40] sm:$0xff] }
   0xb   :  { %2274 = vrot.lane.b32.xlu1 %v2273_v3, %s2452_s19  ;;  %v2278_v8 = vpack.i.bf16 %v2573_v6, %v2568_v5  ;;  %v2288_v12 = vpack.i.bf16 %v2589_v10, %v2584_v9  ;;  %v2606_v14 = vld [vmem:[%s3348_s23 + $0x48] sm:$0xff]  ;;  %v2615_v17 = vld [vmem:[%s3348_s23 + $0x50] sm:$0xff]  ;;  %v2620_v18 = vld [vmem:[%s3348_s23 + $0x58] sm:$0xff] }
   0xc   :  { %2264 = vrot.lane.b32.xlu0 %v2263_v7, %s2453_s20  ;;  %v2298_v16 = vpack.i.bf16 %v2606_v14, %v2601_v13  ;;  %v2308_v19 = vpack.i.bf16 %v2620_v18, %v2615_v17  ;;  %v2629_v20 = vld [vmem:[%s3348_s23 + $0x60] sm:$0xff]  ;;  %v2634_v21 = vld [vmem:[%s3348_s23 + $0x68] sm:$0xff]  ;;  %v101_v23 = vld [vmem:[%s3348_s23 + $0x70] sm:$0xff] }
   0xd   :  { %v2318_v22 = vpack.i.bf16 %v2634_v21, %v2629_v20  ;;  %v102_v24 = vld [vmem:[%s3348_s23 + $0x78] sm:$0xff] }
   0xe   :  { %v2328_v25 = vpack.i.bf16 %v102_v24, %v101_v23 }
   0xf   :  { %2279 = vrot.lane.b32.xlu1 %v2278_v8, %s2452_s19 }
  0x10   :  { %2269 = vrot.lane.b32.xlu0 %v2273_v3, %s2453_s20 }
  0x13   :  { %2289 = vrot.lane.b32.xlu1 %v2288_v12, %s2453_s20 }
  0x14   :  { %2284 = vrot.lane.b32.xlu0 %v2278_v8, %s2453_s20 }
  0x17   :  { %2299 = vrot.lane.b32.xlu1 %v2298_v16, %s2452_s19 }
  0x18   :  { %2294 = vrot.lane.b32.xlu0 %v2288_v12, %s2452_s19 }
  0x1b   :  { %2309 = vrot.lane.b32.xlu1 %v2308_v19, %s2453_s20 }
  0x1c   :  { %2304 = vrot.lane.b32.xlu0 %v2298_v16, %s2453_s20 }
  0x1f   :  { %2319 = vrot.lane.b32.xlu1 %v2318_v22, %s2452_s19 }
  0x20   :  { %2314 = vrot.lane.b32.xlu0 %v2308_v19, %s2452_s19 }
  0x23   :  { %2329 = vrot.lane.b32.xlu1 %v2328_v25, %s2453_s20 }
  0x24   :  { %2324 = vrot.lane.b32.xlu0 %v2318_v22, %s2453_s20 }
  0x27   :  { %2339 = vrot.lane.b32.xlu1 %v2454_v26, %s2452_s19 }
  0x28   :  { %2334 = vrot.lane.b32.xlu0 %v2328_v25, %s2452_s19 }
  0x7d   :  { %v2275_v27 = vpop.permute.xlu1 %2274 }
  0x7e   :  { %v2277_v28 = vunpack.i.h.bf16 %v2275_v27  ;;  %v2276_v29 = vunpack.i.l.bf16 %v2275_v27  ;;  %v2265_v30 = vpop.permute.xlu0 %2264 }
  0x7f   :  { %v2267_v31 = vunpack.i.h.bf16 %v2265_v30  ;;  %v2266_v32 = vunpack.i.l.bf16 %v2265_v30 }
  0x81   :  { %v361_v33 = vsel %vm359_vm1, 0.0, %v2267_v31  ;;  %v360_v34 = vsel %vm359_vm1, 0.0, %v2266_v32  ;;  %v2280_v35 = vpop.permute.xlu1 %2279 }
  0x82   :  { %v2282_v36 = vunpack.i.h.bf16 %v2280_v35  ;;  %v2281_v37 = vunpack.i.l.bf16 %v2280_v35  ;;  %v2270_v38 = vpop.permute.xlu0 %2269  ;;  %v377_v39 = vsel %vm376_vm2, %v360_v34, %v2276_v29  ;;  %v378_v40 = vsel %vm376_vm2, %v361_v33, %v2277_v28 }
  0x83   :  { %v2272_v41 = vunpack.i.h.bf16 %v2270_v38  ;;  %v2271_v42 = vunpack.i.l.bf16 %v2270_v38  ;;  %v393_v43 = vpack.c.bf16 %v378_v40, %v377_v39 }
  0x85   :  { %v363_v44 = vsel %vm359_vm1, %v2563_v4, %v2272_v41  ;;  %v362_v45 = vsel %vm359_vm1, %v2556_v2, %v2271_v42  ;;  %2100 = vmatprep.mubr.msk.bf16.mxu0 %vm415_vm3, %v393_v43  ;;  %v2290_v46 = vpop.permute.xlu1 %2289 }
  0x86   :  { %v2285_v47 = vpop.permute.xlu0 %2284  ;;  %v379_v48 = vsel %vm376_vm2, %v362_v45, %v2281_v37  ;;  %v380_v49 = vsel %vm376_vm2, %v363_v44, %v2282_v36  ;;  %v2292_v50 = vunpack.i.h.bf16 %v2290_v46  ;;  %v2291_v51 = vunpack.i.l.bf16 %v2290_v46 }
  0x87   :  { %v394_v52 = vpack.c.bf16 %v380_v49, %v379_v48  ;;  %v2287_v53 = vunpack.i.h.bf16 %v2285_v47  ;;  %v2286_v54 = vunpack.i.l.bf16 %v2285_v47 }
  0x88   :  { %v367_v59 = vsel %vm359_vm1, %v2573_v6, %v2292_v50  ;;  %v366_v60 = vsel %vm359_vm1, %v2568_v5, %v2291_v51 }
  0x89   :  { %2101 = vmatmul.mubr.msk.bf16.vlgmr.msra.gmra.mrb[0].mxu0 %vm415_vm3, %v394_v52  ;;  %v2300_v55 = vpop.permute.xlu1 %2299  ;;  %v365_v63 = vsel %vm359_vm1, %v2551_v1, %v2287_v53  ;;  %v364_v2 = vsel %vm359_vm1, %v2546_v0, %v2286_v54 }
  0x8a   :  { %v2302_v56 = vunpack.i.h.bf16 %v2300_v55  ;;  %v2301_v57 = vunpack.i.l.bf16 %v2300_v55  ;;  %v2295_v58 = vpop.permute.xlu0 %2294 }
  0x8b   :  { %v2297_v61 = vunpack.i.h.bf16 %v2295_v58  ;;  %v2296_v62 = vunpack.i.l.bf16 %v2295_v58 }
  0x8c   :  { %v383_v3 = vsel %vm376_vm2, %v366_v60, %v2301_v57  ;;  %v384_v4 = vsel %vm376_vm2, %v367_v59, %v2302_v56 }
  0x8d   :  { %v396_v7 = vpack.c.bf16 %v384_v4, %v383_v3  ;;  %v381_v8 = vsel %vm376_vm2, %v364_v2, %v2296_v62  ;;  %v382_v6 = vsel %vm376_vm2, %v365_v63, %v2297_v61  ;;  %v2310_v11 = vpop.permute.xlu1 %2309 }
  0x8e   :  { %v395_v12 = vpack.c.bf16 %v382_v6, %v381_v8  ;;  %v2305_v5 = vpop.permute.xlu0 %2304  ;;  %v2312_v15 = vunpack.i.h.bf16 %v2310_v11  ;;  %v2311_v16 = vunpack.i.l.bf16 %v2310_v11 }
  0x8f   :  { %v2307_v19 = vunpack.i.h.bf16 %v2305_v5  ;;  %v2306_v22 = vunpack.i.l.bf16 %v2305_v5 }
  0x90   :  { %2104 = vmatprep.mubr.msk.bf16.mxu0 %vm415_vm3, %v395_v12  ;;  %v371_v25 = vsel %vm359_vm1, %v2606_v14, %v2312_v15  ;;  %v370_v27 = vsel %vm359_vm1, %v2601_v13, %v2311_v16 }
  0x91   :  { %2105 = vmatmul.mubr.msk.bf16.gmra.mrb[4].mxu0 %vm415_vm3, %v396_v7  ;;  %v2320_v0 = vpop.permute.xlu1 %2319  ;;  %v369_v30 = vsel %vm359_vm1, %v2589_v10, %v2307_v19  ;;  %v368_v31 = vsel %vm359_vm1, %v2584_v9, %v2306_v22 }
  0x92   :  { %v2322_v1 = vunpack.i.h.bf16 %v2320_v0  ;;  %v2321_v23 = vunpack.i.l.bf16 %v2320_v0  ;;  %v2315_v24 = vpop.permute.xlu0 %2314 }
  0x93   :  { %v2317_v28 = vunpack.i.h.bf16 %v2315_v24  ;;  %v2316_v29 = vunpack.i.l.bf16 %v2315_v24 }
  0x94   :  { %v387_v32 = vsel %vm376_vm2, %v370_v27, %v2321_v23  ;;  %v388_v33 = vsel %vm376_vm2, %v371_v25, %v2322_v1 }
  0x95   :  { %v398_v34 = vpack.c.bf16 %v388_v33, %v387_v32  ;;  %v385_v35 = vsel %vm376_vm2, %v368_v31, %v2316_v29  ;;  %v386_v14 = vsel %vm376_vm2, %v369_v30, %v2317_v28  ;;  %v2330_v36 = vpop.permute.xlu1 %2329 }
  0x96   :  { %v397_v37 = vpack.c.bf16 %v386_v14, %v385_v35  ;;  %v2325_v13 = vpop.permute.xlu0 %2324  ;;  %v2332_v38 = vunpack.i.h.bf16 %v2330_v36  ;;  %v2331_v39 = vunpack.i.l.bf16 %v2330_v36 }
  0x97   :  { %v2327_v40 = vunpack.i.h.bf16 %v2325_v13  ;;  %v2326_v41 = vunpack.i.l.bf16 %v2325_v13 }
  0x98   :  { %2108 = vmatprep.mubr.msk.bf16.mxu0 %vm415_vm3, %v397_v37  ;;  %v375_v44 = vsel %vm359_vm1, %v2634_v21, %v2332_v38  ;;  %v374_v45 = vsel %vm359_vm1, %v2629_v20, %v2331_v39  ;;  %v1957_v20 = vld [vmem:[%s3332_s3] ss:$0 sm:$0xff] }
  0x99   :  { %2109 = vmatmul.mubr.msk.bf16.gmra.mrb[8].mxu0 %vm415_vm3, %v398_v34  ;;  %v2340_v9 = vpop.permute.xlu1 %2339  ;;  %v373_v48 = vsel %vm359_vm1, %v2620_v18, %v2327_v40  ;;  %v372_v49 = vsel %vm359_vm1, %v2615_v17, %v2326_v41  ;;  %v2424_v18 = vld [vmem:[%s3331_s6] sm:$0xff]   ;;  %v2425_v17 = vld [vmem:[%s3331_s6 + $0x8] sm:$0xff]  }
  0x9a   :  { %v2342_v10 = vunpack.i.h.bf16 %v2340_v9  ;;  %v2341_v42 = vunpack.i.l.bf16 %v2340_v9  ;;  %v2335_v43 = vpop.permute.xlu0 %2334  ;;  %2116 = vmatprep.subr.bf16.mxu1 %v2424_v18 }
  0x9b   :  { %v2337_v46 = vunpack.i.h.bf16 %v2335_v43  ;;  %v2336_v47 = vunpack.i.l.bf16 %v2335_v43  ;;  %2117 = vmatpush3.bf16.msra.mxu1 %v2424_v18 }
  0x9c   :  { %v391_v50 = vsel %vm376_vm2, %v374_v45, %v2341_v42  ;;  %v392_v51 = vsel %vm376_vm2, %v375_v44, %v2342_v10  ;;  %2118 = vmatprep.subr.bf16.mxu1 %v2425_v17 }
  0x9d   :  { %v400_v52 = vpack.c.bf16 %v392_v51, %v391_v50  ;;  %v389_v53 = vsel %vm376_vm2, %v372_v49, %v2336_v47  ;;  %v390_v21 = vsel %vm376_vm2, %v373_v48, %v2337_v46 }
  0x9e   :  { %v399_v54 = vpack.c.bf16 %v390_v21, %v389_v53 }
  0x9f   :  { %2119 = vmatpush3.bf16.msra.mxu1 %v2425_v17 }
  0xa0   :  { %2112 = vmatprep.mubr.msk.bf16.mxu0 %vm415_vm3, %v399_v54 }
  0xa1   :  { %2113 = vmatmul.mubr.msk.bf16.gmra.mrb[12].mxu0 %vm415_vm3, %v400_v52 }
 0x15c   :  { %v2102_v55 = vpop.f32.mrb[0].mxu0 }
 0x15d   :  { %v2716_v56 = vadd.f32 %v2102_v55, %v1957_v20  ;;  %v478_v57 = vpop.f32.mrb[1].mxu0 }
 0x15e   :  { %v2718_v58 = vadd.f32 %v1957_v20, %v478_v57  ;;  %v2103_v59 = vpop.f32.mrb[2].mxu0 }
 0x15f   :  { %v543_v60 = vsel %vm541_vm4, %v2716_v56, 0.0  ;;  %v2722_v61 = vadd.f32 %v2103_v59, %v1957_v20  ;;  %v481_v62 = vpop.f32.mrb[3].mxu0 }
 0x160   :  { %v542_v63 = vsel %vm541_vm4, %v2718_v58, 0.0  ;;  %v2726_v2 = vadd.f32 %v1957_v20, %v481_v62 }
 0x161   :  { %v544_v3 = vadd.f32 %v543_v60, %v542_v63  ;;  %v558_v4 = vsel %vm541_vm4, %v2722_v61, 0.0 }
 0x162   :  { %v557_v7 = vsel %vm541_vm4, %v2726_v2, 0.0 }
 0x163   :  { %v559_v8 = vadd.f32 %v558_v4, %v557_v7 }
 0x164   :  { %v2106_v6 = vpop.f32.mrb[4].mxu0 }
 0x165   :  { %v494_v11 = vpop.f32.mrb[5].mxu0  ;;  %v2732_v12 = vadd.f32 %v2106_v6, %v1957_v20 }
 0x166   :  { %v2734_v5 = vadd.f32 %v1957_v20, %v494_v11  ;;  %v2107_v15 = vpop.f32.mrb[6].mxu0 }
 0x167   :  { %v497_v16 = vpop.f32.mrb[7].mxu0  ;;  %v2738_v22 = vadd.f32 %v2107_v15, %v1957_v20  ;;  %v547_v23 = vsel %vm541_vm4, %v2732_v12, 0.0 }
 0x168   :  { %v545_v19 = vsel %vm541_vm4, %v2734_v5, 0.0  ;;  %v2740_v0 = vadd.f32 %v1957_v20, %v497_v16 }
 0x169   :  { %v546_v1 = vadd.f32 %v545_v19, %v544_v3  ;;  %v562_v28 = vsel %vm541_vm4, %v2738_v22, 0.0 }
 0x16a   :  { %v560_v24 = vsel %vm541_vm4, %v2740_v0, 0.0 }
 0x16b   :  { %v561_v25 = vadd.f32 %v560_v24, %v559_v8  ;;  %v548_v27 = vadd.f32 %v547_v23, %v546_v1 }
 0x16c   :  { %v2110_v29 = vpop.f32.mrb[8].mxu0 }
 0x16d   :  { %v510_v30 = vpop.f32.mrb[9].mxu0  ;;  %v563_v31 = vadd.f32 %v562_v28, %v561_v25  ;;  %v2748_v32 = vadd.f32 %v2110_v29, %v1957_v20 }
 0x16e   :  { %v2750_v33 = vadd.f32 %v1957_v20, %v510_v30  ;;  %v2111_v34 = vpop.f32.mrb[10].mxu0 }
 0x16f   :  { %v513_v35 = vpop.f32.mrb[11].mxu0  ;;  %v2754_v36 = vadd.f32 %v2111_v34, %v1957_v20  ;;  %v551_v38 = vsel %vm541_vm4, %v2748_v32, 0.0 }
 0x170   :  { %v549_v14 = vsel %vm541_vm4, %v2750_v33, 0.0  ;;  %v2756_v37 = vadd.f32 %v1957_v20, %v513_v35 }
 0x171   :  { %v550_v13 = vadd.f32 %v549_v14, %v548_v27  ;;  %v566_v9 = vsel %vm541_vm4, %v2754_v36, 0.0 }
 0x172   :  { %v564_v39 = vsel %vm541_vm4, %v2756_v37, 0.0 }
 0x173   :  { %v565_v40 = vadd.f32 %v564_v39, %v563_v31  ;;  %v552_v41 = vadd.f32 %v551_v38, %v550_v13 }
 0x174   :  { %v2114_v10 = vpop.f32.mrb[12].mxu0 }
 0x175   :  { %v526_v42 = vpop.f32.mrb[13].mxu0  ;;  %v567_v43 = vadd.f32 %v566_v9, %v565_v40  ;;  %v2764_v44 = vadd.f32 %v2114_v10, %v1957_v20 }
 0x176   :  { %v2766_v45 = vadd.f32 %v1957_v20, %v526_v42  ;;  %v2115_v46 = vpop.f32.mrb[14].mxu0 }
 0x177   :  { %v529_v47 = vpop.f32.mrb[15].mxu0  ;;  %v2770_v49 = vadd.f32 %v2115_v46, %v1957_v20  ;;  %v555_v52 = vsel %vm541_vm4, %v2764_v44, 0.0 }
 0x178   :  { %v553_v48 = vsel %vm541_vm4, %v2766_v45, 0.0  ;;  %v2772_v50 = vadd.f32 %v1957_v20, %v529_v47 }
 0x179   :  { %v554_v51 = vadd.f32 %v553_v48, %v552_v41  ;;  %v570_v18 = vsel %vm541_vm4, %v2770_v49, 0.0 }
 0x17a   :  { %v568_v53 = vsel %vm541_vm4, %v2772_v50, 0.0 }
 0x17b   :  { %v556_v21 = vadd.f32 %v555_v52, %v554_v51  ;;  %v569_v54 = vadd.f32 %v568_v53, %v567_v43 }
 0x17d   :  { %v2780_v17 = vmul.f32 0.125, %v556_v21  ;;  %v571_v55 = vadd.f32 %v570_v18, %v569_v54 }
 0x17f   :  { %v575_v57 = vsub.f32 %v2718_v58, %v2780_v17  ;;  %v577_v20 = vsub.f32 %v2716_v56, %v2780_v17  ;;  %v579_v59 = vsub.f32 %v2734_v5, %v2780_v17  ;;  %v581_v60 = vsub.f32 %v2732_v12, %v2780_v17 }
 0x180   :  { %v583_v62 = vsub.f32 %v2750_v33, %v2780_v17  ;;  %v585_v63 = vsub.f32 %v2748_v32, %v2780_v17  ;;  %v587_v3 = vsub.f32 %v2766_v45, %v2780_v17  ;;  %v589_v4 = vsub.f32 %v2764_v44, %v2780_v17 }
 0x181   :  { %v591_v7 = vmul.f32 %v575_v57, %v575_v57  ;;  %v593_v8 = vmul.f32 %v577_v20, %v577_v20  ;;  %v595_v6 = vmul.f32 %v579_v59, %v579_v59  ;;  %v597_v11 = vmul.f32 %v581_v60, %v581_v60 }
 0x182   :  { %v599_v15 = vmul.f32 %v583_v62, %v583_v62  ;;  %v601_v23 = vmul.f32 %v585_v63, %v585_v63  ;;  %v2801_v25 = vmul.f32 0.125, %v571_v55  ;;  %v603_v27 = vmul.f32 %v587_v3, %v587_v3 }
 0x183   :  { %v607_v16 = vsel %vm541_vm4, %v591_v7, 0.0  ;;  %v608_v19 = vsel %vm541_vm4, %v593_v8, 0.0  ;;  %v610_v24 = vsel %vm541_vm4, %v595_v6, 0.0  ;;  %v612_v29 = vsel %vm541_vm4, %v597_v11, 0.0 }
 0x184   :  { %v609_v1 = vadd.f32 %v608_v19, %v607_v16  ;;  %v614_v30 = vsel %vm541_vm4, %v599_v15, 0.0  ;;  %v576_v31 = vsub.f32 %v2726_v2, %v2801_v25  ;;  %v578_v34 = vsub.f32 %v2722_v61, %v2801_v25 }
 0x185   :  { %v580_v35 = vsub.f32 %v2740_v0, %v2801_v25  ;;  %v582_v14 = vsub.f32 %v2738_v22, %v2801_v25  ;;  %v584_v38 = vsub.f32 %v2756_v37, %v2801_v25  ;;  %v586_v39 = vsub.f32 %v2754_v36, %v2801_v25 }
 0x186   :  { %v611_v28 = vadd.f32 %v610_v24, %v609_v1  ;;  %v588_v40 = vsub.f32 %v2772_v50, %v2801_v25  ;;  %v590_v41 = vsub.f32 %v2770_v49, %v2801_v25  ;;  %v592_v9 = vmul.f32 %v576_v31, %v576_v31 }
 0x187   :  { %v594_v10 = vmul.f32 %v578_v34, %v578_v34  ;;  %v596_v42 = vmul.f32 %v580_v35, %v580_v35  ;;  %v605_v43 = vmul.f32 %v589_v4, %v589_v4  ;;  %v616_v47 = vsel %vm541_vm4, %v601_v23, 0.0  ;;  %v1968_v35 = vld [vmem:[%s3334_s5] ss:$0 sm:$0xff] }
 0x188   :  { %v613_v13 = vadd.f32 %v612_v29, %v611_v28  ;;  %v598_v48 = vmul.f32 %v582_v14, %v582_v14  ;;  %v622_v51 = vsel %vm541_vm4, %v592_v9, 0.0  ;;  %v618_v54 = vsel %vm541_vm4, %v603_v27, 0.0 }
 0x189   :  { %v623_v52 = vsel %vm541_vm4, %v594_v10, 0.0  ;;  %v600_v18 = vmul.f32 %v584_v38, %v584_v38  ;;  %v625_v55 = vsel %vm541_vm4, %v596_v42, 0.0  ;;  %v620_v59 = vsel %vm541_vm4, %v605_v43, 0.0 }
 0x18a   :  { %v615_v46 = vadd.f32 %v614_v30, %v613_v13  ;;  %v624_v21 = vadd.f32 %v623_v52, %v622_v51  ;;  %v602_v60 = vmul.f32 %v586_v39, %v586_v39  ;;  %v627_v62 = vsel %vm541_vm4, %v598_v48, 0.0  ;;  %v1967_v30 = vld [vmem:[%s3333_s4] ss:$0 sm:$0xff] }
 0x18b   :  { %v604_v4 = vmul.f32 %v588_v40, %v588_v40  ;;  %v629_v7 = vsel %vm541_vm4, %v600_v18, 0.0  ;;  %v606_v11 = vmul.f32 %v590_v41, %v590_v41 }
 0x18c   :  { %v617_v53 = vadd.f32 %v616_v47, %v615_v46  ;;  %v626_v20 = vadd.f32 %v625_v55, %v624_v21  ;;  %v631_v15 = vsel %vm541_vm4, %v602_v60, 0.0 }
 0x18d   :  { %v633_v1 = vsel %vm541_vm4, %v604_v4, 0.0  ;;  %v635_v24 = vsel %vm541_vm4, %v606_v11, 0.0 }
 0x18e   :  { %v619_v57 = vadd.f32 %v618_v54, %v617_v53  ;;  %v628_v3 = vadd.f32 %v627_v62, %v626_v20 }
 0x190   :  { %v621_v63 = vadd.f32 %v620_v59, %v619_v57  ;;  %v630_v6 = vadd.f32 %v629_v7, %v628_v3 }
 0x192   :  { %v637_v8 = vmul.f32 0.125, %v621_v63  ;;  %v632_v19 = vadd.f32 %v631_v15, %v630_v6 }
 0x194   :  { %v639_v16 = vadd.f32 1e-05, %v637_v8  ;;  %v634_v23 = vadd.f32 %v633_v1, %v632_v19 }
 0x196   :  { %2444 = vrsqrt.f32 %v639_v16  ;;  %v636_v27 = vadd.f32 %v635_v24, %v634_v23 }
 0x198   :  { %v638_v28 = vmul.f32 0.125, %v636_v27 }
 0x19a   :  { %v640_v29 = vadd.f32 1e-05, %v638_v28 }
 0x19c   :  { %2446 = vrsqrt.f32 %v640_v29 }
 0x1a0   :  { %v2445_v31 = vpop.eup %2444 }
 0x1a1   :  { %v650_v34 = vmul.f32 %v2445_v31, %v1967_v30 }
 0x1a3   :  { %v653_v14 = vmul.f32 %v650_v34, %v2780_v17  ;;  %v675_v13 = vmul.f32 %v650_v34, %v2766_v45  ;;  %v663_v38 = vmul.f32 %v650_v34, %v2718_v58  ;;  %v665_v39 = vmul.f32 %v650_v34, %v2716_v56 }
 0x1a4   :  { %v667_v40 = vmul.f32 %v650_v34, %v2734_v5  ;;  %v669_v41 = vmul.f32 %v650_v34, %v2732_v12  ;;  %v671_v9 = vmul.f32 %v650_v34, %v2750_v33  ;;  %v673_v10 = vmul.f32 %v650_v34, %v2748_v32 }
 0x1a5   :  { %v661_v42 = vsub.f32 %v1968_v35, %v653_v14  ;;  %v677_v43 = vmul.f32 %v650_v34, %v2764_v44 }
 0x1a6   :  { %v2447_v45 = vpop.eup %2446 }
 0x1a7   :  { %v691_v46 = vadd.f32 %v675_v13, %v661_v42  ;;  %v679_v47 = vadd.f32 %v663_v38, %v661_v42  ;;  %v681_v17 = vadd.f32 %v665_v39, %v661_v42  ;;  %v683_v48 = vadd.f32 %v667_v40, %v661_v42 }
 0x1a8   :  { %v685_v51 = vadd.f32 %v669_v41, %v661_v42  ;;  %v687_v58 = vadd.f32 %v671_v9, %v661_v42  ;;  %v689_v52 = vadd.f32 %v673_v10, %v661_v42  ;;  %v693_v56 = vadd.f32 %v677_v43, %v661_v42 }
 0x1a9   :  { %v651_v53 = vmul.f32 %v2447_v45, %v1967_v30  ;;  %v707_v5 = vmax.f32 %v691_v46, 0.0  ;;  %v695_v21 = vmax.f32 %v679_v47, 0.0  ;;  %v697_v59 = vmax.f32 %v681_v17, 0.0 }
 0x1aa   :  { %v699_v60 = vmax.f32 %v683_v48, 0.0  ;;  %v703_v63 = vmax.f32 %v687_v58, 0.0  ;;  %v709_v3 = vmax.f32 %v693_v56, 0.0 }
 0x1ab   :  { %v654_v12 = vmul.f32 %v651_v53, %v2801_v25  ;;  %v676_v33 = vmul.f32 %v651_v53, %v2772_v50  ;;  %v664_v32 = vmul.f32 %v651_v53, %v2726_v2  ;;  %v666_v44 = vmul.f32 %v651_v53, %v2722_v61 }
 0x1ac   :  { %v668_v54 = vmul.f32 %v651_v53, %v2740_v0  ;;  %v670_v18 = vmul.f32 %v651_v53, %v2738_v22  ;;  %v672_v55 = vmul.f32 %v651_v53, %v2756_v37  ;;  %v674_v57 = vmul.f32 %v651_v53, %v2754_v36 }
 0x1ad   :  { %v662_v20 = vsub.f32 %v1968_v35, %v654_v12  ;;  %v678_v62 = vmul.f32 %v651_v53, %v2770_v49  ;;  %v701_v25 = vmax.f32 %v685_v51, 0.0  ;;  %v705_v50 = vmax.f32 %v689_v52, 0.0  ;;  %v2867_v35 = vld [vmem:[%s3335_s1] sm:$0xff]  }
 0x1ae   :  { %2152 = vmatprep.mubr.bf16.mxu0 %v2867_v35 }
 0x1af   :  { %v692_v2 = vadd.f32 %v676_v33, %v662_v20  ;;  %v680_v4 = vadd.f32 %v664_v32, %v662_v20  ;;  %v682_v61 = vadd.f32 %v666_v44, %v662_v20  ;;  %v684_v7 = vadd.f32 %v668_v54, %v662_v20  ;;  %v2873_v32 = vld [vmem:[%s3335_s1 + $0x8] sm:$0xff]   ;;  %v2878_v44 = vld [vmem:[%s3335_s1 + $0x10] sm:$0xff]   ;;  %v2885_v54 = vld [vmem:[%s3335_s1 + $0x18] sm:$0xff]  }
 0x1b0   :  { %v686_v0 = vadd.f32 %v670_v18, %v662_v20  ;;  %v688_v8 = vadd.f32 %v672_v55, %v662_v20  ;;  %v690_v22 = vadd.f32 %v674_v57, %v662_v20  ;;  %v694_v6 = vadd.f32 %v678_v62, %v662_v20  ;;  %v2890_v18 = vld [vmem:[%s3335_s1 + $0x20] sm:$0xff]   ;;  %v2897_v55 = vld [vmem:[%s3335_s1 + $0x28] sm:$0xff]   ;;  %v2902_v57 = vld [vmem:[%s3335_s1 + $0x30] sm:$0xff]  }
 0x1b1   :  { %v708_v37 = vmax.f32 %v692_v2, 0.0  ;;  %v696_v11 = vmax.f32 %v680_v4, 0.0  ;;  %v698_v36 = vmax.f32 %v682_v61, 0.0  ;;  %v700_v15 = vmax.f32 %v684_v7, 0.0  ;;  %v2909_v20 = vld [vmem:[%s3335_s1 + $0x38] sm:$0xff]   ;;  %v2436_v62 = vld [vmem:[%s3336_s8 + $0x10] sm:$0xff]  }
 0x1b2   :  { %v702_v16 = vmax.f32 %v686_v0, 0.0  ;;  %v704_v19 = vmax.f32 %v688_v8, 0.0  ;;  %v706_v1 = vmax.f32 %v690_v22, 0.0  ;;  %v710_v49 = vmax.f32 %v694_v6, 0.0 }
 0x1b3   :  { %v711_v23 = vpack.c.bf16 %v696_v11, %v695_v21  ;;  %v712_v24 = vpack.c.bf16 %v698_v36, %v697_v59  ;;  %v713_v27 = vpack.c.bf16 %v700_v15, %v699_v60  ;;  %v717_v28 = vpack.c.bf16 %v708_v37, %v707_v5  ;;  %v2434_v59 = vld [vmem:[%s3336_s8] sm:$0xff]   ;;  %v2435_v60 = vld [vmem:[%s3336_s8 + $0x8] sm:$0xff]  }
 0x1b4   :  { %v714_v29 = vpack.c.bf16 %v702_v16, %v701_v25  ;;  %v715_v30 = vpack.c.bf16 %v704_v19, %v703_v63  ;;  %v716_v31 = vpack.c.bf16 %v706_v1, %v705_v50  ;;  %v718_v34 = vpack.c.bf16 %v710_v49, %v709_v3  ;;  %2168 = vmatprep.subr.bf16.mxu1 %v2434_v59  ;;  %v2437_v25 = vld [vmem:[%s3336_s8 + $0x18] sm:$0xff]   ;;  %v2927_v63 = vld [vmem:[%s3337_s7] ss:$0 sm:$0xff]  ;;  %v2439_v15 = vld [vmem:[%s3336_s8 + $0x28] sm:$0xff]  }
 0x1b5   :  { %2120 = vmatprep.mubr.msk.bf16.mxu1 %vm541_vm4, %v711_v23  ;;  %v2438_v50 = vld [vmem:[%s3336_s8 + $0x20] sm:$0xff]   ;;  %s2456_s8 = smov 64  }
 0x1b6   :  { %2121 = vmatmul.mubr.msk.bf16.vlgmr.msra.gmra.mrb[0].mxu1 %vm541_vm4, %v712_v24 }
 0x1b7   :  { %2124 = vmatprep.mubr.msk.bf16.mxu1 %vm541_vm4, %v713_v27  ;;  %2169 = vmatpush3.bf16.msra.mxu1 %v2434_v59 }
 0x1b8   :  { %2170 = vmatprep.subr.bf16.mxu1 %v2435_v60 }
 0x1bb   :  { %2171 = vmatpush3.bf16.msra.mxu1 %v2435_v60 }
 0x1bc   :  { %2172 = vmatprep.subr.bf16.mxu1 %v2436_v62 }
 0x1be   :  { %2125 = vmatmul.mubr.msk.bf16.gmra.mrb[4].mxu1 %vm541_vm4, %v714_v29 }
 0x1bf   :  { %2128 = vmatprep.mubr.msk.bf16.mxu1 %vm541_vm4, %v715_v30  ;;  %2173 = vmatpush3.bf16.msra.mxu1 %v2436_v62 }
 0x1c0   :  { %2174 = vmatprep.subr.bf16.mxu1 %v2437_v25 }
 0x1c3   :  { %2175 = vmatpush3.bf16.msra.mxu1 %v2437_v25 }
 0x1c4   :  { %2176 = vmatprep.subr.bf16.mxu1 %v2438_v50 }
 0x1c6   :  { %2129 = vmatmul.mubr.msk.bf16.gmra.mrb[8].mxu1 %vm541_vm4, %v716_v31 }
 0x1c7   :  { %2132 = vmatprep.mubr.msk.bf16.mxu1 %vm541_vm4, %v717_v28  ;;  %2177 = vmatpush3.bf16.msra.mxu1 %v2438_v50 }
 0x1c8   :  { %2178 = vmatprep.subr.bf16.mxu1 %v2439_v15 }
 0x1cb   :  { %2179 = vmatpush3.bf16.msra.mxu1 %v2439_v15 }
 0x1ce   :  { %2133 = vmatmul.mubr.msk.bf16.gmra.mrb[12].mxu1 %vm541_vm4, %v718_v34 }
 0x289   :  { %v2122_v14 = vpop.f32.mrb[0].mxu1 }
 0x28a   :  { %v793_v13 = vpop.f32.mrb[1].mxu1 }
 0x28b   :  { %v2123_v38 = vpop.f32.mrb[2].mxu1 }
 0x28c   :  { %v857_v39 = vpack.c.bf16 %v2123_v38, %v2122_v14  ;;  %v796_v40 = vpop.f32.mrb[3].mxu1 }
 0x28d   :  { %v856_v41 = vpack.c.bf16 %v796_v40, %v793_v13 }
 0x28f   :  { %2136 = vmatprep.subr.bf16.mxu0 %v856_v41 }
 0x290   :  { %2137 = vmatpush3.bf16.msra.mxu0 %v856_v41 }
 0x291   :  { %v2126_v9 = vpop.f32.mrb[4].mxu1  ;;  %2138 = vmatprep.subr.bf16.mxu0 %v857_v39 }
 0x292   :  { %v809_v10 = vpop.f32.mrb[5].mxu1 }
 0x293   :  { %v2127_v42 = vpop.f32.mrb[6].mxu1 }
 0x294   :  { %v859_v43 = vpack.c.bf16 %v2127_v42, %v2126_v9  ;;  %v812_v46 = vpop.f32.mrb[7].mxu1  ;;  %2139 = vmatpush3.bf16.msra.mxu0 %v857_v39 }
 0x295   :  { %v858_v47 = vpack.c.bf16 %v812_v46, %v809_v10 }
 0x297   :  { %2140 = vmatprep.subr.bf16.mxu0 %v858_v47 }
 0x298   :  { %2141 = vmatpush3.bf16.msra.mxu0 %v858_v47 }
 0x299   :  { %v2130_v17 = vpop.f32.mrb[8].mxu1  ;;  %2142 = vmatprep.subr.bf16.mxu0 %v859_v43 }
 0x29a   :  { %v825_v48 = vpop.f32.mrb[9].mxu1 }
 0x29b   :  { %v2131_v45 = vpop.f32.mrb[10].mxu1 }
 0x29c   :  { %v861_v51 = vpack.c.bf16 %v2131_v45, %v2130_v17  ;;  %v828_v58 = vpop.f32.mrb[11].mxu1  ;;  %2143 = vmatpush3.bf16.msra.mxu0 %v859_v43 }
 0x29d   :  { %v860_v52 = vpack.c.bf16 %v828_v58, %v825_v48 }
 0x29f   :  { %2144 = vmatprep.subr.bf16.mxu0 %v860_v52 }
 0x2a0   :  { %2145 = vmatpush3.bf16.msra.mxu0 %v860_v52 }
 0x2a1   :  { %v2134_v56 = vpop.f32.mrb[12].mxu1  ;;  %2146 = vmatprep.subr.bf16.mxu0 %v861_v51 }
 0x2a2   :  { %v841_v53 = vpop.f32.mrb[13].mxu1 }
 0x2a3   :  { %v2135_v5 = vpop.f32.mrb[14].mxu1 }
 0x2a4   :  { %v863_v21 = vpack.c.bf16 %v2135_v5, %v2134_v56  ;;  %v844_v12 = vpop.f32.mrb[15].mxu1  ;;  %2147 = vmatpush3.bf16.msra.mxu0 %v861_v51 }
 0x2a5   :  { %v862_v33 = vpack.c.bf16 %v844_v12, %v841_v53 }
 0x2a7   :  { %2148 = vmatprep.subr.bf16.mxu0 %v862_v33 }
 0x2a8   :  { %2149 = vmatpush3.bf16.msra.mxu0 %v862_v33 }
 0x2a9   :  { %2150 = vmatprep.subr.bf16.mxu0 %v863_v21 }
 0x2ac   :  { %2151 = vmatpush3.bf16.msra.mxu0 %v863_v21 }
 0x2af   :  { %2153 = vmatmul.mubr.bf16.vlgmr.msra.gmra.mrb[16].mxu0 %v2873_v32 }
 0x2b0   :  { %2156 = vmatprep.mubr.bf16.mxu0 %v2878_v44 }
 0x2b7   :  { %2157 = vmatmul.mubr.bf16.gmra.mrb[20].mxu0 %v2885_v54 }
 0x2b8   :  { %2160 = vmatprep.mubr.bf16.mxu0 %v2890_v18 }
 0x2bf   :  { %2161 = vmatmul.mubr.bf16.gmra.mrb[24].mxu0 %v2897_v55 }
 0x2c0   :  { %2164 = vmatprep.mubr.bf16.mxu0 %v2902_v57 }
 0x2c7   :  { %2165 = vmatmul.mubr.bf16.gmra.mrb[28].mxu0 %v2909_v20 }
 0x382   :  { %v2154_v3 = vpop.f32.mrb[16].mxu0 }
 0x383   :  { %v2933_v2 = vadd.f32 %v2154_v3, %v2927_v63  ;;  %v953_v4 = vpop.f32.mrb[17].mxu0 }
 0x384   :  { %v2936_v61 = vadd.f32 %v2927_v63, %v953_v4  ;;  %v2155_v7 = vpop.f32.mrb[18].mxu0 }
 0x385   :  { %v2939_v0 = vadd.f32 %v2155_v7, %v2927_v63  ;;  %v956_v8 = vpop.f32.mrb[19].mxu0  ;;  %v1018_v6 = vmax.f32 %v2933_v2, 0.0 }
 0x386   :  { %v2942_v22 = vadd.f32 %v2927_v63, %v956_v8  ;;  %v1016_v11 = vmax.f32 %v2936_v61, 0.0 }
 0x387   :  { %v1019_v37 = vmax.f32 %v2939_v0, 0.0 }
 0x388   :  { %v1017_v36 = vmax.f32 %v2942_v22, 0.0 }
 0x389   :  { %v2343_v16 = vpack.i.bf16 %v1019_v37, %v1018_v6 }
 0x38a   :  { %v2348_v19 = vpack.i.bf16 %v1017_v36, %v1016_v11  ;;  %v2158_v1 = vpop.f32.mrb[20].mxu0 }
 0x38b   :  { %2344 = vrot.lane.b32.xlu1 %v2343_v16, %s2455_s29  ;;  %v969_v49 = vpop.f32.mrb[21].mxu0  ;;  %v2971_v30 = vadd.f32 %v2158_v1, %v2927_v63 }
 0x38c   :  { %v2961_v23 = vadd.f32 %v2927_v63, %v969_v49  ;;  %v2159_v24 = vpop.f32.mrb[22].mxu0  ;;  %2349 = vrot.lane.b32.xlu0 %v2348_v19, %s2455_s29 }
 0x38d   :  { %v972_v27 = vpop.f32.mrb[23].mxu0  ;;  %v2965_v28 = vadd.f32 %v2159_v24, %v2927_v63  ;;  %v1022_v40 = vmax.f32 %v2971_v30, 0.0 }
 0x38e   :  { %v2968_v29 = vadd.f32 %v2927_v63, %v972_v27  ;;  %v1020_v31 = vmax.f32 %v2961_v23, 0.0 }
 0x38f   :  { %v1023_v14 = vmax.f32 %v2965_v28, 0.0 }
 0x390   :  { %v1021_v34 = vmax.f32 %v2968_v29, 0.0  ;;  %2354 = vrot.lane.b32.xlu0 %v2343_v16, %s2456_s8 }
 0x391   :  { %v2363_v46 = vpack.i.bf16 %v1023_v14, %v1022_v40 }
 0x392   :  { %v2162_v13 = vpop.f32.mrb[24].mxu0  ;;  %v2358_v38 = vpack.i.bf16 %v1021_v34, %v1020_v31 }
 0x393   :  { %v985_v39 = vpop.f32.mrb[25].mxu0  ;;  %v2998_v47 = vadd.f32 %v2162_v13, %v2927_v63 }
 0x394   :  { %v2983_v41 = vadd.f32 %v2927_v63, %v985_v39  ;;  %v2163_v9 = vpop.f32.mrb[26].mxu0  ;;  %2359 = vrot.lane.b32.xlu1 %v2358_v38, %s2456_s8  ;;  %2369 = vrot.lane.b32.xlu0 %v2358_v38, %s2455_s29 }
 0x395   :  { %v988_v10 = vpop.f32.mrb[27].mxu0  ;;  %v2988_v42 = vadd.f32 %v2163_v9, %v2927_v63  ;;  %v1026_v53 = vmax.f32 %v2998_v47, 0.0 }
 0x396   :  { %v2991_v43 = vadd.f32 %v2927_v63, %v988_v10  ;;  %v1024_v17 = vmax.f32 %v2983_v41, 0.0 }
 0x397   :  { %v1027_v45 = vmax.f32 %v2988_v42, 0.0 }
 0x398   :  { %v1025_v48 = vmax.f32 %v2991_v43, 0.0  ;;  %2364 = vrot.lane.b32.xlu1 %v2363_v46, %s2455_s29  ;;  %2374 = vrot.lane.b32.xlu0 %v2363_v46, %s2456_s8 }
 0x399   :  { %v2383_v60 = vpack.i.bf16 %v1027_v45, %v1026_v53 }
 0x39a   :  { %v2166_v51 = vpop.f32.mrb[28].mxu0  ;;  %v2378_v58 = vpack.i.bf16 %v1025_v48, %v1024_v17 }
 0x39b   :  { %v1010_v52 = vadd.f32 %v2166_v51, %v2927_v63  ;;  %v1001_v56 = vpop.f32.mrb[29].mxu0 }
 0x39c   :  { %v3012_v5 = vadd.f32 %v2927_v63, %v1001_v56  ;;  %v2167_v21 = vpop.f32.mrb[30].mxu0  ;;  %2379 = vrot.lane.b32.xlu1 %v2378_v58, %s2456_s8  ;;  %2389 = vrot.lane.b32.xlu0 %v2378_v58, %s2455_s29 }
 0x39d   :  { %v1013_v12 = vadd.f32 %v2167_v21, %v2927_v63  ;;  %v1004_v33 = vpop.f32.mrb[31].mxu0  ;;  %v1030_v62 = vmax.f32 %v1010_v52, 0.0 }
 0x39e   :  { %v3018_v59 = vadd.f32 %v2927_v63, %v1004_v33  ;;  %v1028_v50 = vmax.f32 %v3012_v5, 0.0  ;;  %v2441_v5 = vld [vmem:[%s3338_s12 + $0x8] sm:$0xff]  }
 0x39f   :  { %v1031_v25 = vmax.f32 %v1013_v12, 0.0 }
 0x3a0   :  { %v1029_v3 = vmax.f32 %v3018_v59, 0.0  ;;  %2384 = vrot.lane.b32.xlu1 %v2383_v60, %s2455_s29  ;;  %2394 = vrot.lane.b32.xlu0 %v2383_v60, %s2456_s8  ;;  %v2440_v59 = vld [vmem:[%s3338_s12] sm:$0xff]  }
 0x3a1   :  { %v2413_v4 = vpack.i.bf16 %v1031_v25, %v1030_v62  ;;  %2196 = vmatprep.subr.bf16.mxu0 %v2440_v59 }
 0x3a2   :  { %v2398_v63 = vpack.i.bf16 %v1029_v3, %v1028_v50  ;;  %2197 = vmatpush3.bf16.msra.mxu0 %v2440_v59 }
 0x3a3   :  { %2198 = vmatprep.subr.bf16.mxu0 %v2441_v5 }
 0x3a4   :  { %2399 = vrot.lane.b32.xlu1 %v2398_v63, %s2456_s8  ;;  %2409 = vrot.lane.b32.xlu0 %v2398_v63, %s2455_s29 }
 0x3a6   :  { %2199 = vmatpush3.bf16.msra.mxu0 %v2441_v5 }
 0x3a7   :  { %2248 = vmatprep.subr.bf16.mxu0 %v2454_v26 }
 0x3a8   :  { %2404 = vrot.lane.b32.xlu1 %v2413_v4, %s2455_s29  ;;  %2414 = vrot.lane.b32.xlu0 %v2413_v4, %s2456_s8 }
 0x3ac   :  { %2419 = vrot.lane.b32.xlu1 %v2454_v26, %s2456_s8 }
 0x3fd   :  { %v2345_v16 = vpop.permute.xlu1 %2344 }
 0x3fe   :  { %v2350_v7 = vpop.permute.xlu0 %2349  ;;  %v2347_v24 = vunpack.i.h.bf16 %v2345_v16  ;;  %v2346_v27 = vunpack.i.l.bf16 %v2345_v16 }
 0x3ff   :  { %v2352_v8 = vunpack.i.h.bf16 %v2350_v7  ;;  %v2351_v15 = vunpack.i.l.bf16 %v2350_v7 }
 0x400   :  { %v1194_v56 = vsel %vm541_vm4, %v1016_v11, %v2346_v27  ;;  %v1195_v21 = vsel %vm541_vm4, %v1017_v36, %v2347_v24 }
 0x401   :  { %v1193_v13 = vsel %vm541_vm4, 0.0, %v2352_v8  ;;  %v1192_v38 = vsel %vm541_vm4, 0.0, %v2351_v15 }
 0x402   :  { %v2355_v19 = vpop.permute.xlu0 %2354 }
 0x403   :  { %v2357_v1 = vunpack.i.h.bf16 %v2355_v19  ;;  %v2356_v49 = vunpack.i.l.bf16 %v2355_v19 }
 0x405   :  { %v1209_v39 = vsel %vm1208_vm5, %v1192_v38, %v2356_v49  ;;  %v1210_v9 = vsel %vm1208_vm5, %v1193_v13, %v2357_v1 }
 0x406   :  { %v1225_v10 = vpack.c.bf16 %v1210_v9, %v1209_v39  ;;  %v2360_v46 = vpop.permute.xlu1 %2359  ;;  %v2370_v51 = vpop.permute.xlu0 %2369 }
 0x407   :  { %v2362_v58 = vunpack.i.h.bf16 %v2360_v46  ;;  %v2361_v52 = vunpack.i.l.bf16 %v2360_v46  ;;  %v2372_v12 = vunpack.i.h.bf16 %v2370_v51  ;;  %v2371_v33 = vunpack.i.l.bf16 %v2370_v51 }
 0x408   :  { %2180 = vmatprep.mubr.msk.bf16.mxu1 %vm1288_vm6, %v1225_v10 }
 0x409   :  { %v1211_v60 = vsel %vm1208_vm5, %v1194_v56, %v2361_v52  ;;  %v1212_v62 = vsel %vm1208_vm5, %v1195_v21, %v2362_v58  ;;  %v1197_v61 = vsel %vm541_vm4, %v1019_v37, %v2372_v12  ;;  %v1196_v22 = vsel %vm541_vm4, %v1018_v6, %v2371_v33 }
 0x40a   :  { %v1226_v25 = vpack.c.bf16 %v1212_v62, %v1211_v60  ;;  %v2365_v4 = vpop.permute.xlu1 %2364  ;;  %v2375_v63 = vpop.permute.xlu0 %2374 }
 0x40b   :  { %v2377_v7 = vunpack.i.h.bf16 %v2375_v63  ;;  %v2376_v8 = vunpack.i.l.bf16 %v2375_v63  ;;  %v2367_v11 = vunpack.i.h.bf16 %v2365_v4  ;;  %v2366_v36 = vunpack.i.l.bf16 %v2365_v4 }
 0x40c   :  { %2181 = vmatmul.mubr.msk.bf16.vlgmr.msra.gmra.mrb[16].mxu1 %vm1288_vm6, %v1226_v25 }
 0x40d   :  { %v1213_v15 = vsel %vm1208_vm5, %v1196_v22, %v2376_v8  ;;  %v1214_v16 = vsel %vm1208_vm5, %v1197_v61, %v2377_v7  ;;  %v1199_v0 = vsel %vm541_vm4, %v1021_v34, %v2367_v11  ;;  %v1198_v2 = vsel %vm541_vm4, %v1020_v31, %v2366_v36 }
 0x40e   :  { %v1227_v19 = vpack.c.bf16 %v1214_v16, %v1213_v15  ;;  %v2380_v1 = vpop.permute.xlu1 %2379  ;;  %v2390_v49 = vpop.permute.xlu0 %2389 }
 0x40f   :  { %v2382_v24 = vunpack.i.h.bf16 %v2380_v1  ;;  %v2381_v27 = vunpack.i.l.bf16 %v2380_v1  ;;  %v2392_v6 = vunpack.i.h.bf16 %v2390_v49  ;;  %v2391_v37 = vunpack.i.l.bf16 %v2390_v49 }
 0x410   :  { %2184 = vmatprep.mubr.msk.bf16.mxu1 %vm1288_vm6, %v1227_v19 }
 0x411   :  { %v1215_v13 = vsel %vm1208_vm5, %v1198_v2, %v2381_v27  ;;  %v1216_v38 = vsel %vm1208_vm5, %v1199_v0, %v2382_v24  ;;  %v1201_v29 = vsel %vm541_vm4, %v1023_v14, %v2392_v6  ;;  %v1200_v23 = vsel %vm541_vm4, %v1022_v40, %v2391_v37 }
 0x412   :  { %v1228_v39 = vpack.c.bf16 %v1216_v38, %v1215_v13  ;;  %v2385_v9 = vpop.permute.xlu1 %2384  ;;  %v2395_v10 = vpop.permute.xlu0 %2394 }
 0x413   :  { %v2397_v46 = vunpack.i.h.bf16 %v2395_v10  ;;  %v2396_v51 = vunpack.i.l.bf16 %v2395_v10  ;;  %v2387_v31 = vunpack.i.h.bf16 %v2385_v9  ;;  %v2386_v34 = vunpack.i.l.bf16 %v2385_v9 }
 0x414   :  { %2185 = vmatmul.mubr.msk.bf16.gmra.mrb[20].mxu1 %vm1288_vm6, %v1228_v39 }
 0x415   :  { %v1217_v58 = vsel %vm1208_vm5, %v1200_v23, %v2396_v51  ;;  %v1218_v52 = vsel %vm1208_vm5, %v1201_v29, %v2397_v46  ;;  %v1203_v28 = vsel %vm541_vm4, %v1025_v48, %v2387_v31  ;;  %v1202_v30 = vsel %vm541_vm4, %v1024_v17, %v2386_v34 }
 0x416   :  { %v1229_v56 = vpack.c.bf16 %v1218_v52, %v1217_v58  ;;  %v2400_v21 = vpop.permute.xlu1 %2399  ;;  %v2410_v12 = vpop.permute.xlu0 %2409 }
 0x417   :  { %v2402_v33 = vunpack.i.h.bf16 %v2400_v21  ;;  %v2401_v60 = vunpack.i.l.bf16 %v2400_v21  ;;  %v2412_v14 = vunpack.i.h.bf16 %v2410_v12  ;;  %v2411_v40 = vunpack.i.l.bf16 %v2410_v12 }
 0x418   :  { %2188 = vmatprep.mubr.msk.bf16.mxu1 %vm1288_vm6, %v1229_v56 }
 0x419   :  { %v1219_v62 = vsel %vm1208_vm5, %v1202_v30, %v2401_v60  ;;  %v1220_v25 = vsel %vm1208_vm5, %v1203_v28, %v2402_v33  ;;  %v1205_v43 = vsel %vm541_vm4, %v1027_v45, %v2412_v14  ;;  %v1204_v41 = vsel %vm541_vm4, %v1026_v53, %v2411_v40 }
 0x41a   :  { %v1230_v4 = vpack.c.bf16 %v1220_v25, %v1219_v62  ;;  %v2405_v63 = vpop.permute.xlu1 %2404  ;;  %v2415_v7 = vpop.permute.xlu0 %2414 }
 0x41b   :  { %v2417_v8 = vunpack.i.h.bf16 %v2415_v7  ;;  %v2416_v61 = vunpack.i.l.bf16 %v2415_v7  ;;  %v2407_v17 = vunpack.i.h.bf16 %v2405_v63  ;;  %v2406_v48 = vunpack.i.l.bf16 %v2405_v63 }
 0x41c   :  { %2189 = vmatmul.mubr.msk.bf16.gmra.mrb[24].mxu1 %vm1288_vm6, %v1230_v4 }
 0x41d   :  { %v1221_v22 = vsel %vm1208_vm5, %v1204_v41, %v2416_v61  ;;  %v1222_v11 = vsel %vm1208_vm5, %v1205_v43, %v2417_v8  ;;  %v1207_v42 = vsel %vm541_vm4, %v1029_v3, %v2407_v17  ;;  %v1206_v47 = vsel %vm541_vm4, %v1028_v50, %v2406_v48  ;;  %v1988_v50 = vld [vmem:[%s3339_s9] ss:$0 sm:$0xff] }
 0x41e   :  { %v1231_v36 = vpack.c.bf16 %v1222_v11, %v1221_v22  ;;  %v2420_v15 = vpop.permute.xlu1 %2419 }
 0x41f   :  { %v2422_v16 = vunpack.i.h.bf16 %v2420_v15  ;;  %v2421_v19 = vunpack.i.l.bf16 %v2420_v15 }
 0x420   :  { %2192 = vmatprep.mubr.msk.bf16.mxu1 %vm1288_vm6, %v1231_v36 }
 0x421   :  { %v1223_v45 = vsel %vm1208_vm5, %v1206_v47, %v2421_v19  ;;  %v1224_v53 = vsel %vm1208_vm5, %v1207_v42, %v2422_v16 }
 0x422   :  { %v1232_v1 = vpack.c.bf16 %v1224_v53, %v1223_v45 }
 0x424   :  { %2193 = vmatmul.mubr.msk.bf16.gmra.mrb[28].mxu1 %vm1288_vm6, %v1232_v1 }
 0x425   :  { %2232 = vmatprep.mubr.bf16.mxu1 %v2867_v35 }
 0x4df   :  { %v2182_v3 = vpop.f32.mrb[16].mxu1 }
 0x4e0   :  { %v3117_v35 = vadd.f32 %v2182_v3, %v1988_v50  ;;  %v1347_v49 = vpop.f32.mrb[17].mxu1 }
 0x4e1   :  { %v3119_v24 = vadd.f32 %v1988_v50, %v1347_v49  ;;  %v2183_v27 = vpop.f32.mrb[18].mxu1 }
 0x4e2   :  { %v1411_v0 = vsel %vm541_vm4, %v3117_v35, 0.0  ;;  %v3123_v2 = vadd.f32 %v2183_v27, %v1988_v50  ;;  %v1350_v6 = vpop.f32.mrb[19].mxu1 }
 0x4e3   :  { %v1410_v37 = vsel %vm541_vm4, %v3119_v24, 0.0  ;;  %v3127_v13 = vadd.f32 %v1988_v50, %v1350_v6 }
 0x4e4   :  { %v1412_v38 = vadd.f32 %v1411_v0, %v1410_v37  ;;  %v1426_v39 = vsel %vm541_vm4, %v3123_v2, 0.0 }
 0x4e5   :  { %v1425_v9 = vsel %vm541_vm4, %v3127_v13, 0.0 }
 0x4e6   :  { %v1427_v10 = vadd.f32 %v1426_v39, %v1425_v9 }
 0x4e7   :  { %v2186_v46 = vpop.f32.mrb[20].mxu1 }
 0x4e8   :  { %v1363_v51 = vpop.f32.mrb[21].mxu1  ;;  %v3133_v29 = vadd.f32 %v2186_v46, %v1988_v50 }
 0x4e9   :  { %v3135_v23 = vadd.f32 %v1988_v50, %v1363_v51  ;;  %v2187_v31 = vpop.f32.mrb[22].mxu1 }
 0x4ea   :  { %v1366_v34 = vpop.f32.mrb[23].mxu1  ;;  %v3139_v52 = vadd.f32 %v2187_v31, %v1988_v50  ;;  %v1415_v12 = vsel %vm541_vm4, %v3133_v29, 0.0 }
 0x4eb   :  { %v1413_v58 = vsel %vm541_vm4, %v3135_v23, 0.0  ;;  %v3141_v56 = vadd.f32 %v1988_v50, %v1366_v34 }
 0x4ec   :  { %v1414_v21 = vadd.f32 %v1413_v58, %v1412_v38  ;;  %v1430_v30 = vsel %vm541_vm4, %v3139_v52, 0.0 }
 0x4ed   :  { %v1428_v33 = vsel %vm541_vm4, %v3141_v56, 0.0 }
 0x4ee   :  { %v1429_v60 = vadd.f32 %v1428_v33, %v1427_v10  ;;  %v1416_v28 = vadd.f32 %v1415_v12, %v1414_v21 }
 0x4ef   :  { %v2190_v14 = vpop.f32.mrb[24].mxu1 }
 0x4f0   :  { %v1379_v40 = vpop.f32.mrb[25].mxu1  ;;  %v1431_v62 = vadd.f32 %v1430_v30, %v1429_v60  ;;  %v3149_v25 = vadd.f32 %v2190_v14, %v1988_v50 }
 0x4f1   :  { %v3151_v4 = vadd.f32 %v1988_v50, %v1379_v40  ;;  %v2191_v63 = vpop.f32.mrb[26].mxu1 }
 0x4f2   :  { %v1382_v7 = vpop.f32.mrb[27].mxu1  ;;  %v3155_v61 = vadd.f32 %v2191_v63, %v1988_v50  ;;  %v1419_v17 = vsel %vm541_vm4, %v3149_v25, 0.0 }
 0x4f3   :  { %v1417_v8 = vsel %vm541_vm4, %v3151_v4, 0.0  ;;  %v3157_v43 = vadd.f32 %v1988_v50, %v1382_v7 }
 0x4f4   :  { %v1418_v41 = vadd.f32 %v1417_v8, %v1416_v28  ;;  %v1434_v36 = vsel %vm541_vm4, %v3155_v61, 0.0 }
 0x4f5   :  { %v1432_v48 = vsel %vm541_vm4, %v3157_v43, 0.0 }
 0x4f6   :  { %v1433_v22 = vadd.f32 %v1432_v48, %v1431_v62  ;;  %v1420_v11 = vadd.f32 %v1419_v17, %v1418_v41 }
 0x4f7   :  { %v2194_v15 = vpop.f32.mrb[28].mxu1 }
 0x4f8   :  { %v1395_v16 = vpop.f32.mrb[29].mxu1  ;;  %v1435_v19 = vadd.f32 %v1434_v36, %v1433_v22  ;;  %v3165_v42 = vadd.f32 %v2194_v15, %v1988_v50 }
 0x4f9   :  { %v3167_v47 = vadd.f32 %v1988_v50, %v1395_v16  ;;  %v2195_v45 = vpop.f32.mrb[30].mxu1 }
 0x4fa   :  { %v1398_v53 = vpop.f32.mrb[31].mxu1  ;;  %v3171_v59 = vadd.f32 %v2195_v45, %v1988_v50  ;;  %v1423_v49 = vsel %vm541_vm4, %v3165_v42, 0.0 }
 0x4fb   :  { %v1421_v1 = vsel %vm541_vm4, %v3167_v47, 0.0  ;;  %v3173_v5 = vadd.f32 %v1988_v50, %v1398_v53 }
 0x4fc   :  { %v1422_v3 = vadd.f32 %v1421_v1, %v1420_v11  ;;  %v1438_v37 = vsel %vm541_vm4, %v3171_v59, 0.0 }
 0x4fd   :  { %v1436_v27 = vsel %vm541_vm4, %v3173_v5, 0.0 }
 0x4fe   :  { %v1424_v0 = vadd.f32 %v1423_v49, %v1422_v3  ;;  %v1437_v6 = vadd.f32 %v1436_v27, %v1435_v19 }
 0x500   :  { %v3181_v38 = vmul.f32 0.125, %v1424_v0  ;;  %v1439_v39 = vadd.f32 %v1438_v37, %v1437_v6 }
 0x502   :  { %v1442_v9 = vsub.f32 %v3119_v24, %v3181_v38  ;;  %v1444_v50 = vsub.f32 %v3117_v35, %v3181_v38  ;;  %v1446_v10 = vsub.f32 %v3135_v23, %v3181_v38  ;;  %v1448_v46 = vsub.f32 %v3133_v29, %v3181_v38 }
 0x503   :  { %v1450_v51 = vsub.f32 %v3151_v4, %v3181_v38  ;;  %v1452_v31 = vsub.f32 %v3149_v25, %v3181_v38  ;;  %v1454_v34 = vsub.f32 %v3167_v47, %v3181_v38  ;;  %v1456_v58 = vsub.f32 %v3165_v42, %v3181_v38 }
 0x504   :  { %v1458_v21 = vmul.f32 %v1442_v9, %v1442_v9  ;;  %v1460_v12 = vmul.f32 %v1444_v50, %v1444_v50  ;;  %v1462_v33 = vmul.f32 %v1446_v10, %v1446_v10  ;;  %v1464_v60 = vmul.f32 %v1448_v46, %v1448_v46 }
 0x505   :  { %v1466_v28 = vmul.f32 %v1450_v51, %v1450_v51  ;;  %v1468_v62 = vmul.f32 %v1452_v31, %v1452_v31  ;;  %v3202_v7 = vmul.f32 0.125, %v1439_v39  ;;  %v1470_v8 = vmul.f32 %v1454_v34, %v1454_v34 }
 0x506   :  { %v1474_v30 = vsel %vm541_vm4, %v1458_v21, 0.0  ;;  %v1475_v14 = vsel %vm541_vm4, %v1460_v12, 0.0  ;;  %v1477_v63 = vsel %vm541_vm4, %v1462_v33, 0.0  ;;  %v1479_v17 = vsel %vm541_vm4, %v1464_v60, 0.0 }
 0x507   :  { %v1476_v40 = vadd.f32 %v1475_v14, %v1474_v30  ;;  %v1481_v48 = vsel %vm541_vm4, %v1466_v28, 0.0  ;;  %v1443_v22 = vsub.f32 %v3127_v13, %v3202_v7  ;;  %v1445_v11 = vsub.f32 %v3123_v2, %v3202_v7 }
 0x508   :  { %v1447_v36 = vsub.f32 %v3141_v56, %v3202_v7  ;;  %v1449_v15 = vsub.f32 %v3139_v52, %v3202_v7  ;;  %v1451_v19 = vsub.f32 %v3157_v43, %v3202_v7  ;;  %v1453_v45 = vsub.f32 %v3155_v61, %v3202_v7 }
 0x509   :  { %v1478_v41 = vadd.f32 %v1477_v63, %v1476_v40  ;;  %v1455_v53 = vsub.f32 %v3173_v5, %v3202_v7  ;;  %v1457_v1 = vsub.f32 %v3171_v59, %v3202_v7  ;;  %v1459_v3 = vmul.f32 %v1443_v22, %v1443_v22 }
 0x50a   :  { %v1461_v49 = vmul.f32 %v1445_v11, %v1445_v11  ;;  %v1463_v27 = vmul.f32 %v1447_v36, %v1447_v36  ;;  %v1472_v0 = vmul.f32 %v1456_v58, %v1456_v58  ;;  %v1483_v37 = vsel %vm541_vm4, %v1468_v62, 0.0 }
 0x50b   :  { %v1480_v16 = vadd.f32 %v1479_v17, %v1478_v41  ;;  %v1465_v39 = vmul.f32 %v1449_v15, %v1449_v15  ;;  %v1489_v9 = vsel %vm541_vm4, %v1459_v3, 0.0  ;;  %v1485_v51 = vsel %vm541_vm4, %v1470_v8, 0.0  ;;  %v2004_v3 = vld [vmem:[%s3341_s11] ss:$0 sm:$0xff] }
 0x50c   :  { %v1490_v50 = vsel %vm541_vm4, %v1461_v49, 0.0  ;;  %v1467_v31 = vmul.f32 %v1451_v19, %v1451_v19  ;;  %v1492_v34 = vsel %vm541_vm4, %v1463_v27, 0.0  ;;  %v1487_v33 = vsel %vm541_vm4, %v1472_v0, 0.0 }
 0x50d   :  { %v1482_v6 = vadd.f32 %v1481_v48, %v1480_v16  ;;  %v1491_v46 = vadd.f32 %v1490_v50, %v1489_v9  ;;  %v1469_v58 = vmul.f32 %v1453_v45, %v1453_v45  ;;  %v1494_v60 = vsel %vm541_vm4, %v1465_v39, 0.0  ;;  %v2003_v45 = vld [vmem:[%s3340_s10] ss:$0 sm:$0xff] }
 0x50e   :  { %v1471_v14 = vmul.f32 %v1455_v53, %v1455_v53  ;;  %v1496_v40 = vsel %vm541_vm4, %v1467_v31, 0.0  ;;  %v1473_v41 = vmul.f32 %v1457_v1, %v1457_v1 }
 0x50f   :  { %v1484_v10 = vadd.f32 %v1483_v37, %v1482_v6  ;;  %v1493_v12 = vadd.f32 %v1492_v34, %v1491_v46  ;;  %v1498_v8 = vsel %vm541_vm4, %v1469_v58, 0.0 }
 0x510   :  { %v1500_v22 = vsel %vm541_vm4, %v1471_v14, 0.0  ;;  %v1502_v36 = vsel %vm541_vm4, %v1473_v41, 0.0 }
 0x511   :  { %v1486_v21 = vadd.f32 %v1485_v51, %v1484_v10  ;;  %v1495_v30 = vadd.f32 %v1494_v60, %v1493_v12 }
 0x513   :  { %v1488_v28 = vadd.f32 %v1487_v33, %v1486_v21  ;;  %v1497_v63 = vadd.f32 %v1496_v40, %v1495_v30 }
 0x515   :  { %v1504_v62 = vmul.f32 0.125, %v1488_v28  ;;  %v1499_v48 = vadd.f32 %v1498_v8, %v1497_v63 }
 0x517   :  { %v1506_v17 = vadd.f32 1e-05, %v1504_v62  ;;  %v1501_v11 = vadd.f32 %v1500_v22, %v1499_v48 }
 0x519   :  { %2448 = vrsqrt.f32 %v1506_v17  ;;  %v1503_v15 = vadd.f32 %v1502_v36, %v1501_v11 }
 0x51b   :  { %v1505_v16 = vmul.f32 0.125, %v1503_v15 }
 0x51d   :  { %v1507_v19 = vadd.f32 1e-05, %v1505_v16 }
 0x51f   :  { %2450 = vrsqrt.f32 %v1507_v19 }
 0x523   :  { %v2449_v53 = vpop.eup %2448 }
 0x524   :  { %v1517_v1 = vmul.f32 %v2449_v53, %v2003_v45 }
 0x526   :  { %v1520_v49 = vmul.f32 %v1517_v1, %v3181_v38  ;;  %v1542_v27 = vmul.f32 %v1517_v1, %v3167_v47  ;;  %v1530_v0 = vmul.f32 %v1517_v1, %v3119_v24  ;;  %v1532_v6 = vmul.f32 %v1517_v1, %v3117_v35 }
 0x527   :  { %v1534_v37 = vmul.f32 %v1517_v1, %v3135_v23  ;;  %v1536_v39 = vmul.f32 %v1517_v1, %v3133_v29  ;;  %v1538_v9 = vmul.f32 %v1517_v1, %v3151_v4  ;;  %v1540_v50 = vmul.f32 %v1517_v1, %v3149_v25 }
 0x528   :  { %v1528_v10 = vsub.f32 %v2004_v3, %v1520_v49  ;;  %v1544_v46 = vmul.f32 %v1517_v1, %v3165_v42 }
 0x529   :  { %v2451_v47 = vpop.eup %2450 }
 0x52a   :  { %v1558_v51 = vadd.f32 %v1542_v27, %v1528_v10  ;;  %v1546_v31 = vadd.f32 %v1530_v0, %v1528_v10  ;;  %v1548_v38 = vadd.f32 %v1532_v6, %v1528_v10  ;;  %v1550_v34 = vadd.f32 %v1534_v37, %v1528_v10 }
 0x52b   :  { %v1552_v21 = vadd.f32 %v1536_v39, %v1528_v10  ;;  %v1554_v24 = vadd.f32 %v1538_v9, %v1528_v10  ;;  %v1556_v12 = vadd.f32 %v1540_v50, %v1528_v10  ;;  %v1560_v35 = vadd.f32 %v1544_v46, %v1528_v10 }
 0x52c   :  { %v1518_v33 = vmul.f32 %v2451_v47, %v2003_v45  ;;  %v1574_v23 = vmax.f32 %v1558_v51, 0.0  ;;  %v1562_v58 = vmax.f32 %v1546_v31, 0.0  ;;  %v1564_v62 = vmax.f32 %v1548_v38, 0.0 }
 0x52d   :  { %v1566_v63 = vmax.f32 %v1550_v34, 0.0  ;;  %v1570_v8 = vmax.f32 %v1554_v24, 0.0  ;;  %v1576_v17 = vmax.f32 %v1560_v35, 0.0 }
 0x52e   :  { %v1521_v29 = vmul.f32 %v1518_v33, %v3202_v7  ;;  %v1543_v4 = vmul.f32 %v1518_v33, %v3173_v5  ;;  %v1531_v25 = vmul.f32 %v1518_v33, %v3127_v13  ;;  %v1533_v42 = vmul.f32 %v1518_v33, %v3123_v2 }
 0x52f   :  { %v1535_v60 = vmul.f32 %v1518_v33, %v3141_v56  ;;  %v1537_v28 = vmul.f32 %v1518_v33, %v3139_v52  ;;  %v1539_v30 = vmul.f32 %v1518_v33, %v3157_v43  ;;  %v1541_v14 = vmul.f32 %v1518_v33, %v3155_v61 }
 0x530   :  { %v1529_v40 = vsub.f32 %v2004_v3, %v1521_v29  ;;  %v1545_v41 = vmul.f32 %v1518_v33, %v3171_v59  ;;  %v1568_v7 = vmax.f32 %v1552_v21, 0.0  ;;  %v1572_v5 = vmax.f32 %v1556_v12, 0.0 }
 0x532   :  { %v1559_v13 = vadd.f32 %v1543_v4, %v1529_v40  ;;  %v1547_v48 = vadd.f32 %v1531_v25, %v1529_v40  ;;  %v1549_v2 = vadd.f32 %v1533_v42, %v1529_v40  ;;  %v1551_v22 = vadd.f32 %v1535_v60, %v1529_v40 }
 0x533   :  { %v1553_v56 = vadd.f32 %v1537_v28, %v1529_v40  ;;  %v1555_v11 = vadd.f32 %v1539_v30, %v1529_v40  ;;  %v1557_v52 = vadd.f32 %v1541_v14, %v1529_v40  ;;  %v1561_v36 = vadd.f32 %v1545_v41, %v1529_v40  ;;  %v2442_v40 = vld [vmem:[%s3342_s14] sm:$0xff]  }
 0x534   :  { %v1575_v43 = vmax.f32 %v1559_v13, 0.0  ;;  %v1563_v15 = vmax.f32 %v1547_v48, 0.0  ;;  %v1565_v61 = vmax.f32 %v1549_v2, 0.0  ;;  %v1567_v16 = vmax.f32 %v1551_v22, 0.0 }
 0x535   :  { %v1569_v19 = vmax.f32 %v1553_v56, 0.0  ;;  %v1571_v45 = vmax.f32 %v1555_v11, 0.0  ;;  %v1573_v53 = vmax.f32 %v1557_v52, 0.0  ;;  %v1577_v59 = vmax.f32 %v1561_v36, 0.0 }
 0x536   :  { %v1578_v1 = vpack.c.bf16 %v1563_v15, %v1562_v58  ;;  %v1579_v3 = vpack.c.bf16 %v1565_v61, %v1564_v62  ;;  %v1580_v49 = vpack.c.bf16 %v1567_v16, %v1566_v63  ;;  %v1584_v27 = vpack.c.bf16 %v1575_v43, %v1574_v23 }
 0x537   :  { %v1581_v0 = vpack.c.bf16 %v1569_v19, %v1568_v7  ;;  %v1582_v6 = vpack.c.bf16 %v1571_v45, %v1570_v8  ;;  %v1583_v37 = vpack.c.bf16 %v1573_v53, %v1572_v5  ;;  %v1585_v39 = vpack.c.bf16 %v1577_v59, %v1576_v17 }
 0x538   :  { %2200 = vmatprep.mubr.msk.bf16.mxu0 %vm541_vm4, %v1578_v1 }
 0x539   :  { %2201 = vmatmul.mubr.msk.bf16.vlgmr.msra.gmra.mrb[32].mxu0 %vm541_vm4, %v1579_v3 }
 0x53a   :  { %2204 = vmatprep.mubr.msk.bf16.mxu0 %vm541_vm4, %v1580_v49  ;;  %2249 = vmatpush3.bf16.msra.mxu0 %v2442_v40 }
 0x53b   :  { %2250 = vmatprep.subr.bf16.mxu0 %v2454_v26 }
 0x541   :  { %2205 = vmatmul.mubr.msk.bf16.gmra.mrb[36].mxu0 %vm541_vm4, %v1581_v0 }
 0x542   :  { %2208 = vmatprep.mubr.msk.bf16.mxu0 %vm541_vm4, %v1582_v6 }
 0x549   :  { %2209 = vmatmul.mubr.msk.bf16.gmra.mrb[40].mxu0 %vm541_vm4, %v1583_v37 }
 0x54a   :  { %2212 = vmatprep.mubr.msk.bf16.mxu0 %vm541_vm4, %v1584_v27 }
 0x551   :  { %2213 = vmatmul.mubr.msk.bf16.gmra.mrb[44].mxu0 %vm541_vm4, %v1585_v39 }
 0x552   :  { %2252 = vmatprep.mubr.msk.bf16.mxu0 %vm2457_vm7, %v2454_v26 }
 0x60c   :  { %v2202_v9 = vpop.f32.mrb[32].mxu0 }
 0x60d   :  { %v1660_v50 = vpop.f32.mrb[33].mxu0 }
 0x60e   :  { %v2203_v10 = vpop.f32.mrb[34].mxu0 }
 0x60f   :  { %v1724_v46 = vpack.c.bf16 %v2203_v10, %v2202_v9  ;;  %v1663_v51 = vpop.f32.mrb[35].mxu0 }
 0x610   :  { %v1723_v31 = vpack.c.bf16 %v1663_v51, %v1660_v50 }
 0x612   :  { %2216 = vmatprep.subr.bf16.mxu1 %v1723_v31 }
 0x613   :  { %2217 = vmatpush3.bf16.msra.mxu1 %v1723_v31 }
 0x614   :  { %v2206_v38 = vpop.f32.mrb[36].mxu0  ;;  %2218 = vmatprep.subr.bf16.mxu1 %v1724_v46 }
 0x615   :  { %v1676_v34 = vpop.f32.mrb[37].mxu0 }
 0x616   :  { %v2207_v47 = vpop.f32.mrb[38].mxu0 }
 0x617   :  { %v1726_v21 = vpack.c.bf16 %v2207_v47, %v2206_v38  ;;  %v1679_v24 = vpop.f32.mrb[39].mxu0  ;;  %2219 = vmatpush3.bf16.msra.mxu1 %v1724_v46 }
 0x618   :  { %v1725_v12 = vpack.c.bf16 %v1679_v24, %v1676_v34 }
 0x61a   :  { %2220 = vmatprep.subr.bf16.mxu1 %v1725_v12 }
 0x61b   :  { %2221 = vmatpush3.bf16.msra.mxu1 %v1725_v12 }
 0x61c   :  { %v2210_v35 = vpop.f32.mrb[40].mxu0  ;;  %2222 = vmatprep.subr.bf16.mxu1 %v1726_v21 }
 0x61d   :  { %v1692_v33 = vpop.f32.mrb[41].mxu0 }
 0x61e   :  { %v2211_v23 = vpop.f32.mrb[42].mxu0 }
 0x61f   :  { %v1728_v58 = vpack.c.bf16 %v2211_v23, %v2210_v35  ;;  %v1695_v29 = vpop.f32.mrb[43].mxu0  ;;  %2223 = vmatpush3.bf16.msra.mxu1 %v1726_v21 }
 0x620   :  { %v1727_v4 = vpack.c.bf16 %v1695_v29, %v1692_v33 }
 0x622   :  { %2224 = vmatprep.subr.bf16.mxu1 %v1727_v4 }
 0x623   :  { %2225 = vmatpush3.bf16.msra.mxu1 %v1727_v4 }
 0x624   :  { %v2214_v25 = vpop.f32.mrb[44].mxu0  ;;  %2226 = vmatprep.subr.bf16.mxu1 %v1728_v58 }
 0x625   :  { %v1708_v42 = vpop.f32.mrb[45].mxu0 }
 0x626   :  { %v2215_v60 = vpop.f32.mrb[46].mxu0 }
 0x627   :  { %v1730_v28 = vpack.c.bf16 %v2215_v60, %v2214_v25  ;;  %v1711_v30 = vpop.f32.mrb[47].mxu0  ;;  %2227 = vmatpush3.bf16.msra.mxu1 %v1728_v58 }
 0x628   :  { %v1729_v14 = vpack.c.bf16 %v1711_v30, %v1708_v42 }
 0x62a   :  { %2228 = vmatprep.subr.bf16.mxu1 %v1729_v14 }
 0x62b   :  { %2229 = vmatpush3.bf16.msra.mxu1 %v1729_v14 }
 0x62c   :  { %2230 = vmatprep.subr.bf16.mxu1 %v1730_v28 }
 0x62f   :  { %2231 = vmatpush3.bf16.msra.mxu1 %v1730_v28 }
 0x632   :  { %2233 = vmatmul.mubr.bf16.vlgmr.msra.gmra.mrb[32].mxu1 %v2873_v32  ;;  %v2443_v32 = vld [vmem:[%s3342_s14 + $0x8] sm:$0xff]  }
 0x633   :  { %2236 = vmatprep.mubr.bf16.mxu1 %v2878_v44  ;;  %2251 = vmatpush3.bf16.msra.mxu0 %v2443_v32  ;;  %v3283_v44 = vld [vmem:[%s3343_s13] ss:$0 sm:$0xff] }
 0x63a   :  { %2237 = vmatmul.mubr.bf16.gmra.mrb[36].mxu1 %v2885_v54 }
 0x63b   :  { %2240 = vmatprep.mubr.bf16.mxu1 %v2890_v18 }
 0x642   :  { %2241 = vmatmul.mubr.bf16.gmra.mrb[40].mxu1 %v2897_v55 }
 0x643   :  { %2244 = vmatprep.mubr.bf16.mxu1 %v2902_v57 }
 0x64a   :  { %2245 = vmatmul.mubr.bf16.gmra.mrb[44].mxu1 %v2909_v20 }
 0x705   :  { %v2234_v54 = vpop.f32.mrb[32].mxu1 }
 0x706   :  { %v1781_v18 = vadd.f32 %v2234_v54, %v3283_v44  ;;  %v1772_v55 = vpop.f32.mrb[33].mxu1 }
 0x707   :  { %v1773_v57 = vadd.f32 %v3283_v44, %v1772_v55  ;;  %v2235_v20 = vpop.f32.mrb[34].mxu1 }
 0x708   :  { %v1837_v62 = vmax.f32 %v1781_v18, 0.0  ;;  %v1784_v63 = vadd.f32 %v2235_v20, %v3283_v44  ;;  %v1775_v41 = vpop.f32.mrb[35].mxu1 }
 0x709   :  { %v1835_v7 = vmax.f32 %v1773_v57, 0.0  ;;  %v1776_v8 = vadd.f32 %v3283_v44, %v1775_v41 }
 0x70a   :  { %v1852_v26 = vsel %vm541_vm4, %v1837_v62, 0.0  ;;  %v1838_v5 = vmax.f32 %v1784_v63, 0.0 }
 0x70b   :  { %v1851_v17 = vsel %vm541_vm4, %v1835_v7, 0.0  ;;  %v1836_v13 = vmax.f32 %v1776_v8, 0.0 }
 0x70c   :  { %v1853_v48 = vadd.f32 %v1852_v26, %v1851_v17  ;;  %v1867_v2 = vsel %vm541_vm4, %v1838_v5, 0.0 }
 0x70d   :  { %v1866_v22 = vsel %vm541_vm4, %v1836_v13, 0.0  ;;  %v2238_v56 = vpop.f32.mrb[36].mxu1 }
 0x70e   :  { %v1868_v11 = vadd.f32 %v1867_v2, %v1866_v22  ;;  %v1797_v52 = vadd.f32 %v2238_v56, %v3283_v44  ;;  %v1788_v36 = vpop.f32.mrb[37].mxu1 }
 0x70f   :  { %v1789_v43 = vadd.f32 %v3283_v44, %v1788_v36  ;;  %v2239_v15 = vpop.f32.mrb[38].mxu1 }
 0x710   :  { %v1800_v61 = vadd.f32 %v2239_v15, %v3283_v44  ;;  %v1791_v16 = vpop.f32.mrb[39].mxu1  ;;  %v1841_v19 = vmax.f32 %v1797_v52, 0.0 }
 0x711   :  { %v1839_v45 = vmax.f32 %v1789_v43, 0.0  ;;  %v1792_v53 = vadd.f32 %v3283_v44, %v1791_v16 }
 0x712   :  { %v1842_v1 = vmax.f32 %v1800_v61, 0.0  ;;  %v1856_v27 = vsel %vm541_vm4, %v1841_v19, 0.0 }
 0x713   :  { %v1854_v59 = vsel %vm541_vm4, %v1839_v45, 0.0  ;;  %v1840_v3 = vmax.f32 %v1792_v53, 0.0 }
 0x714   :  { %v1855_v49 = vadd.f32 %v1854_v59, %v1853_v48  ;;  %v1871_v10 = vsel %vm541_vm4, %v1842_v1, 0.0 }
 0x715   :  { %v1869_v0 = vsel %vm541_vm4, %v1840_v3, 0.0  ;;  %v2242_v6 = vpop.f32.mrb[40].mxu1 }
 0x716   :  { %v1870_v37 = vadd.f32 %v1869_v0, %v1868_v11  ;;  %v1813_v39 = vadd.f32 %v2242_v6, %v3283_v44  ;;  %v1804_v9 = vpop.f32.mrb[41].mxu1  ;;  %v1857_v50 = vadd.f32 %v1856_v27, %v1855_v49 }
 0x717   :  { %v1805_v46 = vadd.f32 %v3283_v44, %v1804_v9  ;;  %v2243_v51 = vpop.f32.mrb[42].mxu1 }
 0x718   :  { %v1816_v31 = vadd.f32 %v2243_v51, %v3283_v44  ;;  %v1807_v38 = vpop.f32.mrb[43].mxu1  ;;  %v1872_v34 = vadd.f32 %v1871_v10, %v1870_v37  ;;  %v1845_v47 = vmax.f32 %v1813_v39, 0.0 }
 0x719   :  { %v1843_v21 = vmax.f32 %v1805_v46, 0.0  ;;  %v1808_v24 = vadd.f32 %v3283_v44, %v1807_v38 }
 0x71a   :  { %v1846_v35 = vmax.f32 %v1816_v31, 0.0  ;;  %v1860_v58 = vsel %vm541_vm4, %v1845_v47, 0.0 }
 0x71b   :  { %v1858_v12 = vsel %vm541_vm4, %v1843_v21, 0.0  ;;  %v1844_v33 = vmax.f32 %v1808_v24, 0.0 }
 0x71c   :  { %v1859_v23 = vadd.f32 %v1858_v12, %v1857_v50  ;;  %v1875_v30 = vsel %vm541_vm4, %v1846_v35, 0.0 }
 0x71d   :  { %v1873_v29 = vsel %vm541_vm4, %v1844_v33, 0.0  ;;  %v2246_v4 = vpop.f32.mrb[44].mxu1 }
 0x71e   :  { %v1874_v25 = vadd.f32 %v1873_v29, %v1872_v34  ;;  %v1829_v42 = vadd.f32 %v2246_v4, %v3283_v44  ;;  %v1820_v60 = vpop.f32.mrb[45].mxu1  ;;  %v1861_v28 = vadd.f32 %v1860_v58, %v1859_v23 }
 0x71f   :  { %v1821_v14 = vadd.f32 %v3283_v44, %v1820_v60  ;;  %v2247_v40 = vpop.f32.mrb[46].mxu1 }
 0x720   :  { %v1832_v32 = vadd.f32 %v2247_v40, %v3283_v44  ;;  %v1823_v54 = vpop.f32.mrb[47].mxu1  ;;  %v1876_v18 = vadd.f32 %v1875_v30, %v1874_v25  ;;  %v1849_v55 = vmax.f32 %v1829_v42, 0.0 }
 0x721   :  { %v1847_v57 = vmax.f32 %v1821_v14, 0.0  ;;  %v1824_v20 = vadd.f32 %v3283_v44, %v1823_v54  ;;  %v2016_v44 = vld [vmem:[%s3344_s15] ss:$0 sm:$0xff] }
 0x722   :  { %v1850_v63 = vmax.f32 %v1832_v32, 0.0  ;;  %v1864_v8 = vsel %vm541_vm4, %v1849_v55, 0.0 }
 0x723   :  { %v1862_v62 = vsel %vm541_vm4, %v1847_v57, 0.0  ;;  %v1848_v41 = vmax.f32 %v1824_v20, 0.0 }
 0x724   :  { %v1863_v7 = vadd.f32 %v1862_v62, %v1861_v28  ;;  %v1879_v13 = vsel %vm541_vm4, %v1850_v63, 0.0 }
 0x725   :  { %v1877_v26 = vsel %vm541_vm4, %v1848_v41, 0.0 }
 0x726   :  { %v1865_v5 = vadd.f32 %v1864_v8, %v1863_v7  ;;  %v1878_v17 = vadd.f32 %v1877_v26, %v1876_v18 }
 0x728   :  { %v1880_v48 = vadd.f32 %v1879_v13, %v1878_v17  ;;  %v1881_v2 = vmul.f32 0.125, %v1865_v5 }
 0x72a   :  { %v1882_v22 = vmul.f32 0.125, %v1880_v48 }
 0x72c   :  { %v1883_v56 = vpack.c.bf16 %v1882_v22, %v1881_v2 }
 0x72e   :  { %2253 = vmatmul.mubr.msk.bf16.vlgmr.msra.gmra.mrb[48].mxu0 %vm541_vm4, %v1883_v56 }
 0x801   :  { %v1944_v11 = vpop.f32.mrb[48].mxu0 }
 0x802   :  { %v1945_v52 = vadd.f32 %v2016_v44, %v1944_v11  ;;  %v2254_v36 = vpop.f32.mrb[49].mxu0 }
 0x803   :  { %v1947_v43 = vpop.f32.mrb[50].mxu0 }
 0x804   :  { %1951 = vst.msk [vmem:[%s3345_s16] sm:$0xff] %vm376_vm2, %v1945_v52  ;;  %v1948_v15 = vadd.f32 %v2016_v44, %v1947_v43  ;;  %v2255_v61 = vpop.f32.mrb[51].mxu0 }
 0x806   :  { %1952 = vst.msk [vmem:[%s3345_s16 + $0x8] sm:$0xff] %vm376_vm2, %v1948_v15 }

</bundles_post_ra>
